<compile_context>
chip_gen: v7x
topology: tpu7x:2x2x1
jax: 0.10.0
libtpu: 0.0.40
codegen_flags: <defaults>
</compile_context>

<pallas_src>
import functools

import jax
import jax.numpy as jnp
from jax.experimental import pallas as pl
from jax.experimental.pallas import tpu as pltpu


_TILE_M = 1024                    # max rows (N*Ho*Wo) per grid step
_EPS = 1e-5                       # nn.BatchNorm2d default
_VMEM_LIMIT = 48 * 1024 * 1024    # safe on v7x (64 MiB phys); v5e/v6e have headroom


def _cdiv(a, b):
    return -(-a // b)


def _round_up(x, m):
    return _cdiv(x, m) * m


def _compiler_params(grid_rank):
    return pltpu.CompilerParams(
        dimension_semantics=("parallel",) * grid_rank,
        vmem_limit_bytes=_VMEM_LIMIT)


# ------------------------------- kernels ------------------------------------


def _conv_stats_kernel(taps_ref, w_ref, y_ref, sum_ref, ssq_ref):
    """Full-depth (K = kh*kw*Cin) MXU matmul for one (M, Cout) tile, plus the
    per-tile per-channel sum / sum-of-squares partials for training-mode BN."""
    acc = jnp.dot(taps_ref[...], w_ref[...], preferred_element_type=jnp.float32)
    y_ref[...] = acc.astype(y_ref.dtype)                        # bf16 HBM traffic
    sum_ref[0, :, :] = jnp.sum(acc, axis=0, keepdims=True)      # stats from f32 acc
    ssq_ref[0, :, :] = jnp.sum(acc * acc, axis=0, keepdims=True)


def _conv_bias_kernel(taps_ref, w_ref, b_ref, o_ref):
    """Plain conv (im2col matmul) + bias, for the 7x7/2 stem (no BN here)."""
    acc = jnp.dot(taps_ref[...], w_ref[...], preferred_element_type=jnp.float32)
    o_ref[...] = (acc + b_ref[...]).astype(o_ref.dtype)


def _linear_softmax_kernel(x_ref, w_ref, b_ref, o_ref):
    """Classifier: logits = x @ W^T + b (bf16 in, f32 acc), softmax over classes."""
    logits = jnp.dot(x_ref[...], w_ref[...], preferred_element_type=jnp.float32)
    logits = logits + b_ref[...]
    m = jnp.max(logits, axis=-1, keepdims=True)
    e = jnp.exp(logits - m)
    o_ref[...] = e / jnp.sum(e, axis=-1, keepdims=True)


# --------------------- cached per-shape pallas_call builders ----------------


@functools.lru_cache(maxsize=None)
def _conv_stats_call(nmt, tile_m, nct, tile_c, k):
    m_pad, cout = nmt * tile_m, nct * tile_c
    return pl.pallas_call(
        _conv_stats_kernel,
        grid=(nmt, nct),
        in_specs=[
            pl.BlockSpec((tile_m, k), lambda i, j: (i, 0)),   # M-tiled im2col rows
            pl.BlockSpec((k, tile_c), lambda i, j: (0, j)),   # packed weight slab
        ],
        out_specs=(
            pl.BlockSpec((tile_m, tile_c), lambda i, j: (i, j)),
            pl.BlockSpec((1, 1, tile_c), lambda i, j: (i, 0, j)),
            pl.BlockSpec((1, 1, tile_c), lambda i, j: (i, 0, j)),
        ),
        out_shape=(
            jax.ShapeDtypeStruct((m_pad, cout), jnp.bfloat16),
            jax.ShapeDtypeStruct((nmt, 1, cout), jnp.float32),
            jax.ShapeDtypeStruct((nmt, 1, cout), jnp.float32),
        ),
        compiler_params=_compiler_params(2),
    )


@functools.lru_cache(maxsize=None)
def _conv_bias_call(nmt, tile_m, k, cout):
    m_pad = nmt * tile_m
    return pl.pallas_call(
        _conv_bias_kernel,
        grid=(nmt,),
        in_specs=[
            pl.BlockSpec((tile_m, k), lambda i: (i, 0)),
            pl.BlockSpec((k, cout), lambda i: (0, 0)),
            pl.BlockSpec((1, cout), lambda i: (0, 0)),
        ],
        out_specs=pl.BlockSpec((tile_m, cout), lambda i: (i, 0)),
        out_shape=jax.ShapeDtypeStruct((m_pad, cout), jnp.bfloat16),
        compiler_params=_compiler_params(1),
    )


@functools.lru_cache(maxsize=None)
def _linear_softmax_call(n, k, c):
    return pl.pallas_call(
        _linear_softmax_kernel,
        in_specs=[pl.BlockSpec(memory_space=pltpu.MemorySpace.VMEM)] * 3,
        out_specs=pl.BlockSpec(memory_space=pltpu.MemorySpace.VMEM),
        out_shape=jax.ShapeDtypeStruct((n, c), jnp.float32),
    )


# ------------------------------ conv wrappers --------------------------------


def _im2col(x_nhwc, kh, kw, stride, pad, k_pad):
    """(N,H,W,C) -> bf16 (M, k_pad): taps folded into the contraction dim.

    Cast to bf16 happens BEFORE pad/slice/concat (halves the glue traffic); K
    is zero-padded to the packed weight's lane-aligned depth.
    """
    n, h, w, c = x_nhwc.shape
    ho = (h + 2 * pad - kh) // stride + 1
    wo = (w + 2 * pad - kw) // stride + 1
    xp = jnp.pad(x_nhwc.astype(jnp.bfloat16),
                 ((0, 0), (pad, pad), (pad, pad), (0, 0)))
    cols = [xp[:, i:i + stride * (ho - 1) + 1:stride,
                  j:j + stride * (wo - 1) + 1:stride, :]
            for i in range(kh) for j in range(kw)]
    patches = jnp.concatenate(cols, axis=-1).reshape(n * ho * wo, kh * kw * c)
    if k_pad != kh * kw * c:
        patches = jnp.pad(patches, ((0, 0), (0, k_pad - kh * kw * c)))
    return patches, ho, wo


def _tile_rows(patches, m):
    """Balanced M tile (multiple of 16 rows); skip the pad copy when exact."""
    nmt = max(1, _cdiv(m, _TILE_M))
    tile_m = _round_up(_cdiv(m, nmt), 16)
    nmt = _cdiv(m, tile_m)
    m_pad = nmt * tile_m
    if m_pad != m:
        patches = jnp.pad(patches, ((0, m_pad - m), (0, 0)))
    return patches, tile_m, nmt


def _cout_split(nmt, cout):
    """v7x megacore: with a single M tile, split Cout so both TCs get work."""
    if nmt == 1 and cout % 256 == 0:
        return cout // 2, 2
    return cout, 1


def conv3x3_bn_relu(x_nhwc, w_packed, gamma, beta, *, stride, eps=_EPS):
    """Fused 3x3 conv (bias dropped: cancelled by BN) + train-mode BN + ReLU."""
    n = x_nhwc.shape[0]
    k, cout = w_packed.shape
    patches, ho, wo = _im2col(x_nhwc, 3, 3, stride, 1, k)
    m = n * ho * wo
    patches, tile_m, nmt = _tile_rows(patches, m)
    tile_c, nct = _cout_split(nmt, cout)

    y, tsum, tsq = _conv_stats_call(nmt, tile_m, nct, tile_c, k)(patches, w_packed)

    # Tiny global BN reduction outside the kernel; zero-padded rows contribute
    # nothing so dividing by the true M is exact.
    mean = jnp.sum(tsum[:, 0, :], axis=0) / m
    var = jnp.maximum(jnp.sum(tsq[:, 0, :], axis=0) / m - mean * mean, 0.0)
    scale = gamma * jax.lax.rsqrt(var + eps)
    shift = beta - mean * scale

    # BN affine + ReLU stays as XLA glue: under the single outer jit it fuses
    # with the next layer's im2col slicing, so there is no separate HBM round
    # trip (replaces the earlier dedicated pass-2 Pallas kernel).
    act = jnp.maximum(y[:m].astype(jnp.float32) * scale + shift, 0.0)
    return act.astype(jnp.bfloat16).reshape(n, ho, wo, cout)


def conv_bias(x_nhwc, w_packed, bias, *, kh, kw, stride, pad):
    """im2col conv + bias (the 7x7/2 stem conv of this ResNet34 variant)."""
    n = x_nhwc.shape[0]
    k, cout = w_packed.shape
    patches, ho, wo = _im2col(x_nhwc, kh, kw, stride, pad, k)
    m = n * ho * wo
    patches, tile_m, nmt = _tile_rows(patches, m)
    y = _conv_bias_call(nmt, tile_m, k, cout)(
        patches, w_packed, bias.reshape(1, cout).astype(jnp.float32))
    return y[:m].reshape(n, ho, wo, cout)


def linear_softmax(feat, w_t, b):
    n, k = feat.shape
    c = w_t.shape[1]
    return _linear_softmax_call(n, k, c)(
        feat.astype(jnp.bfloat16), w_t, b.reshape(1, c).astype(jnp.float32))


def _pool2x2(x_nhwc, mode):
    # 2x2 stride-2 pooling kept as XLA reshape glue (trivial, memory-bound).
    n, h, w, c = x_nhwc.shape
    xr = x_nhwc.reshape(n, h // 2, 2, w // 2, 2, c)
    if mode == "max":
        return jnp.max(xr, axis=(2, 4))
    return jnp.mean(xr.astype(jnp.float32), axis=(2, 4)).astype(x_nhwc.dtype)


# ------------------------------- model ---------------------------------------


def block_forward(x_nhwc, bp, *, stride):
    """Block.forward: conv1-bn1-relu1-conv2-bn2-relu2 (training-mode BN)."""
    x = conv3x3_bn_relu(x_nhwc, bp["w1p"], bp["g1"], bp["beta1"], stride=stride)
    x = conv3x3_bn_relu(x, bp["w2p"], bp["g2"], bp["beta2"], stride=1)
    return x


def resnet34_forward(x_nchw, params, cfg):
    """ResNet34.forward: NCHW in, (N, num_classes) softmax probabilities out."""
    x = jnp.transpose(x_nchw, (0, 2, 3, 1))      # single transpose at the boundary
    x = conv_bias(x, params["conv1_wp"], params["conv1_b"],
                  kh=7, kw=7, stride=2, pad=3)
    x = _pool2x2(x, "max")
    for bp, (_, _, stride) in zip(params["blocks"], cfg):
        x = block_forward(x, bp, stride=stride)
    x = _pool2x2(x, "avg")
    n = x.shape[0]
    feat = jnp.transpose(x, (0, 3, 1, 2)).reshape(n, -1)   # PyTorch .view order
    return linear_softmax(feat, params["fc_wT"], params["fc_b"])


# ----------------------------- params / packing ------------------------------


def resnet34_config(in_channel=64):
    cfg, last = [], in_channel
    for ch, num_blocks, stride in ((64, 3, 1), (128, 4, 2), (256, 6, 2), (512, 3, 2)):
        cfg.append((last, ch, stride))
        last = ch
        cfg.extend((ch, ch, 1) for _ in range(num_blocks - 1))
    return cfg


def init_block_params(key, cin, cout):
    ks = jax.random.split(key, 8)
    s1, s2 = 1.0 / (cin * 9) ** 0.5, 1.0 / (cout * 9) ** 0.5
    return {
        "w1": jax.random.normal(ks[0], (cout, cin, 3, 3), jnp.float32) * s1,
        "b1": 0.1 * jax.random.normal(ks[1], (cout,), jnp.float32),
        "g1": 1.0 + 0.1 * jax.random.normal(ks[2], (cout,), jnp.float32),
        "beta1": 0.1 * jax.random.normal(ks[3], (cout,), jnp.float32),
        "w2": jax.random.normal(ks[4], (cout, cout, 3, 3), jnp.float32) * s2,
        "b2": 0.1 * jax.random.normal(ks[5], (cout,), jnp.float32),
        "g2": 1.0 + 0.1 * jax.random.normal(ks[6], (cout,), jnp.float32),
        "beta2": 0.1 * jax.random.normal(ks[7], (cout,), jnp.float32),
    }


def init_resnet_params(key, in_channel=64, num_classes=2):
    cfg = resnet34_config(in_channel)
    keys = jax.random.split(key, len(cfg) + 4)
    params = {
        "conv1_w": jax.random.normal(keys[0], (in_channel, 3, 7, 7), jnp.float32)
                   / (3 * 49) ** 0.5,
        "conv1_b": 0.1 * jax.random.normal(keys[1], (in_channel,), jnp.float32),
        "fc_w": jax.random.normal(keys[2], (num_classes, 4608), jnp.float32)
                / 4608 ** 0.5,
        "fc_b": 0.1 * jax.random.normal(keys[3], (num_classes,), jnp.float32),
        "blocks": [init_block_params(keys[4 + i], cin, cout)
                   for i, (cin, cout, _) in enumerate(cfg)],
    }
    return params, cfg


def _pack_conv_w(w_oihw):
    """(Cout,Cin,kh,kw) -> (round_up(kh*kw*Cin,128), Cout) bf16, zero-row padded."""
    cout, cin, kh, kw = w_oihw.shape
    k = kh * kw * cin
    k_pad = _round_up(k, 128)
    wp = jnp.transpose(w_oihw, (2, 3, 1, 0)).reshape(k, cout)
    if k_pad != k:
        wp = jnp.pad(wp, ((0, k_pad - k), (0, 0)))
    return wp.astype(jnp.bfloat16)


def pack_block_params(bp):
    # Conv biases are intentionally dropped: exactly cancelled by batch-stat BN.
    return {
        "w1p": _pack_conv_w(bp["w1"]), "g1": bp["g1"], "beta1": bp["beta1"],
        "w2p": _pack_conv_w(bp["w2"]), "g2": bp["g2"], "beta2": bp["beta2"],
    }


def pack_params(params):
    return {
        "conv1_wp": _pack_conv_w(params["conv1_w"]),
        "conv1_b": params["conv1_b"],
        "fc_wT": jnp.transpose(params["fc_w"]).astype(jnp.bfloat16),
        "fc_b": params["fc_b"],
        "blocks": [pack_block_params(bp) for bp in params["blocks"]],
    }


# ---------------------------- pure-JAX references -----------------------------


def _ref_conv_bf16(x_nhwc, w_oihw, *, stride, pad):
    """Reference conv with the same dtype policy: bf16 operands, f32 accum."""
    return jax.lax.conv_general_dilated(
        x_nhwc.astype(jnp.bfloat16), w_oihw.astype(jnp.bfloat16),
        window_strides=(stride, stride), padding=((pad, pad), (pad, pad)),
        dimension_numbers=("NHWC", "OIHW", "NHWC"),
        preferred_element_type=jnp.float32)


def ref_block_torch(x_nhwc, bp, *, stride):
    """PyTorch-faithful Block math: conv WITH bias, centred batch variance,
    unfactored BN affine (semantic check for the kernel's algebraic folds)."""
    def bn_relu(y, g, b):
        mean = jnp.mean(y, axis=(0, 1, 2), keepdims=True)
        var = jnp.mean((y - mean) ** 2, axis=(0, 1, 2), keepdims=True)
        return jnp.maximum((y - mean) * jax.lax.rsqrt(var + _EPS) * g + b, 0.0)
    y = _ref_conv_bf16(x_nhwc, bp["w1"], stride=stride, pad=1) + bp["b1"]
    x = bn_relu(y, bp["g1"], bp["beta1"]).astype(jnp.bfloat16)
    y = _ref_conv_bf16(x, bp["w2"], stride=1, pad=1) + bp["b2"]
    return bn_relu(y, bp["g2"], bp["beta2"])


def _ref_bn_relu_matched(y32, gamma, beta, eps=_EPS):
    """Same arithmetic path as the kernel: stats from f32 conv output,
    uncentred variance, folded scale/shift applied to the bf16-stored y."""
    mean = jnp.mean(y32, axis=(0, 1, 2))
    var = jnp.maximum(jnp.mean(y32 * y32, axis=(0, 1, 2)) - mean * mean, 0.0)
    scale = gamma * jax.lax.rsqrt(var + eps)
    shift = beta - mean * scale
    y = y32.astype(jnp.bfloat16).astype(jnp.float32)
    return jnp.maximum(y * scale + shift, 0.0).astype(jnp.bfloat16)


def ref_block_matched(x_nhwc, bp, *, stride):
    y = _ref_conv_bf16(x_nhwc, bp["w1"], stride=stride, pad=1)   # bias cancelled by BN
    x = _ref_bn_relu_matched(y, bp["g1"], bp["beta1"])
    y = _ref_conv_bf16(x, bp["w2"], stride=1, pad=1)
    return _ref_bn_relu_matched(y, bp["g2"], bp["beta2"])


def ref_resnet34_matched(x_nchw, params, cfg):
    x = jnp.transpose(x_nchw, (0, 2, 3, 1))
    y = _ref_conv_bf16(x, params["conv1_w"], stride=2, pad=3) + params["conv1_b"]
    x = y.astype(jnp.bfloat16)
    x = _pool2x2(x, "max")
    for bp, (_, _, stride) in zip(params["blocks"], cfg):
        x = ref_block_matched(x, bp, stride=stride)
    x = _pool2x2(x, "avg")
    n = x.shape[0]
    feat = jnp.transpose(x, (0, 3, 1, 2)).reshape(n, -1)
    logits = jnp.dot(feat.astype(jnp.bfloat16),
                     jnp.transpose(params["fc_w"]).astype(jnp.bfloat16),
                     preferred_element_type=jnp.float32) + params["fc_b"]
    return jax.nn.softmax(logits, axis=-1)


# ---------------------------------- main --------------------------------------


if __name__ == "__main__":
    key = jax.random.PRNGKey(0)
    k_bx, k_bp, k_x, k_p = jax.random.split(key, 4)

    # 1) Unit check: one Block (stride 2) at a multi-tile M with K/row padding,
    #    validated against the PyTorch-faithful math (conv bias + centred BN).
    xb = jax.random.normal(k_bx, (2, 48, 48, 8), jnp.float32)         # NHWC
    bp_raw = init_block_params(k_bp, 8, 16)
    bp = pack_block_params(bp_raw)
    block_fn = jax.jit(lambda x, p: block_forward(x, p, stride=2))
    out_b = jax.block_until_ready(block_fn(xb, bp)).astype(jnp.float32)
    ref_b = jax.jit(lambda x, p: ref_block_torch(x, p, stride=2))(xb, bp_raw)
    assert out_b.shape == (2, 24, 24, 16), out_b.shape
    diff_b = jnp.abs(out_b - ref_b)
    b_max = float(jnp.max(diff_b))
    b_rms = float(jnp.sqrt(jnp.mean(diff_b * diff_b)))
    assert b_max < 2e-1, (b_max, b_rms)
    assert b_rms < 3e-2, (b_max, b_rms)

    # 2) Full ResNet34 forward under ONE jit (192x192 input is implied by the
    #    4608-wide classifier: 512 channels x 3 x 3 after the final avg-pool),
    #    validated tightly against a reference with the identical dtype policy.
    params, cfg = init_resnet_params(k_p, in_channel=64, num_classes=2)
    packed = pack_params(params)
    x = jax.random.normal(k_x, (2, 3, 192, 192), jnp.float32)          # NCHW
    fwd = jax.jit(lambda xx, pp: resnet34_forward(xx, pp, cfg))
    out = jax.block_until_ready(fwd(x, packed))
    ref = jax.jit(lambda xx, pp: ref_resnet34_matched(xx, pp, cfg))(x, params)
    assert out.shape == (2, 2), out.shape
    assert bool(jnp.all(jnp.isfinite(out)))
    assert bool(jnp.allclose(jnp.sum(out, axis=-1), 1.0, atol=1e-5))
    full_err = float(jnp.max(jnp.abs(out - ref)))
    assert full_err < 6e-2, full_err
    print("KERNEL_OK")
</pallas_src>

<mosaic_0001>
module attributes {stable_mosaic.version = 11 : i64} {
  func.func @_conv_stats_kernel(%arg0: i32, %arg1: i32, %arg2: memref<576x128xbf16, #tpu.memory_space<vmem>>, %arg3: memref<128x16xbf16, #tpu.memory_space<vmem>>, %arg4: memref<576x16xbf16, #tpu.memory_space<vmem>>, %arg5: memref<1x1x16xf32, #tpu.memory_space<vmem>>, %arg6: memref<1x1x16xf32, #tpu.memory_space<vmem>>) attributes {dimension_semantics = [#tpu.dimension_semantics<parallel>, #tpu.dimension_semantics<parallel>], iteration_bounds = array<i64: 2, 1>, scalar_prefetch = 0 : i64, scratch_operands = 0 : i64, tpu.core_type = #tpu.core_type<tc>, window_params = [{transform_indices = @transform_0, window_bounds = array<i64: 576, 128>}, {transform_indices = @transform_1, window_bounds = array<i64: 128, 16>}, {transform_indices = @transform_2, window_bounds = array<i64: 576, 16>}, {transform_indices = @transform_3, window_bounds = array<i64: 1, 1, 16>}, {transform_indices = @transform_4, window_bounds = array<i64: 1, 1, 16>}]} {
    %c0 = arith.constant 0 : index
    %c0_0 = arith.constant 0 : index
    %0 = vector.load %arg2[%c0, %c0_0] : memref<576x128xbf16, #tpu.memory_space<vmem>>, vector<576x128xbf16>
    %c0_1 = arith.constant 0 : index
    %c0_2 = arith.constant 0 : index
    %1 = vector.load %arg3[%c0_1, %c0_2] : memref<128x16xbf16, #tpu.memory_space<vmem>>, vector<128x16xbf16>
    %cst = arith.constant dense<0.000000e+00> : vector<576x16xf32>
    %2 = tpu.matmul %0, %1, %cst {dimension_numbers = #tpu.dot_dimension_numbers<[1], [0], [0], [1], [0, 0, 1, 1], [], []>} : vector<576x128xbf16>, vector<128x16xbf16>, vector<576x16xf32> -> vector<576x16xf32>
    %3 = arith.truncf %2 : vector<576x16xf32> to vector<576x16xbf16>
    %c0_3 = arith.constant 0 : index
    %c0_4 = arith.constant 0 : index
    %4 = vector.load %arg4[%c0_3, %c0_4] : memref<576x16xbf16, #tpu.memory_space<vmem>>, vector<576x16xbf16>
    tpu.vector_store %arg4[%c0_3, %c0_4], %3 {strides = array<i32>} : memref<576x16xbf16, #tpu.memory_space<vmem>>, vector<576x16xbf16>,
    %cst_5 = arith.constant dense<0.000000e+00> : vector<16xf32>
    %5 = vector.multi_reduction <add>, %2, %cst_5 [0] : vector<576x16xf32> to vector<16xf32>
    %6 = vector.shape_cast %5 : vector<16xf32> to vector<1x16xf32>
    %c0_6 = arith.constant 0 : index
    %c0_7 = arith.constant 0 : index
    %c0_8 = arith.constant 0 : index
    %7 = vector.load %arg5[%c0_6, %c0_7, %c0_8] : memref<1x1x16xf32, #tpu.memory_space<vmem>>, vector<1x1x16xf32>
    %8 = vector.shape_cast %7 : vector<1x1x16xf32> to vector<1x16xf32>
    %9 = vector.shape_cast %6 : vector<1x16xf32> to vector<1x1x16xf32>
    tpu.vector_store %arg5[%c0_6, %c0_7, %c0_8], %9 {strides = array<i32>} : memref<1x1x16xf32, #tpu.memory_space<vmem>>, vector<1x1x16xf32>,
    %10 = arith.mulf %2, %2 : vector<576x16xf32>
    %cst_9 = arith.constant dense<0.000000e+00> : vector<16xf32>
    %11 = vector.multi_reduction <add>, %10, %cst_9 [0] : vector<576x16xf32> to vector<16xf32>
    %12 = vector.shape_cast %11 : vector<16xf32> to vector<1x16xf32>
    %c0_10 = arith.constant 0 : index
    %c0_11 = arith.constant 0 : index
    %c0_12 = arith.constant 0 : index
    %13 = vector.load %arg6[%c0_10, %c0_11, %c0_12] : memref<1x1x16xf32, #tpu.memory_space<vmem>>, vector<1x1x16xf32>
    %14 = vector.shape_cast %13 : vector<1x1x16xf32> to vector<1x16xf32>
    %15 = vector.shape_cast %12 : vector<1x16xf32> to vector<1x1x16xf32>
    tpu.vector_store %arg6[%c0_10, %c0_11, %c0_12], %15 {strides = array<i32>} : memref<1x1x16xf32, #tpu.memory_space<vmem>>, vector<1x1x16xf32>,
    return
  }
  func.func @transform_0(%arg0: i32, %arg1: i32) -> (i32, i32) {
    %c0_i32 = arith.constant 0 : i32
    %c0_i32_0 = arith.constant 0 : i32
    return %arg0, %c0_i32 : i32, i32
  }
  func.func @transform_1(%arg0: i32, %arg1: i32) -> (i32, i32) {
    %c0_i32 = arith.constant 0 : i32
    %c0_i32_0 = arith.constant 0 : i32
    return %c0_i32, %arg1 : i32, i32
  }
  func.func @transform_2(%arg0: i32, %arg1: i32) -> (i32, i32) {
    %c0_i32 = arith.constant 0 : i32
    return %arg0, %arg1 : i32, i32
  }
  func.func @transform_3(%arg0: i32, %arg1: i32) -> (i32, i32, i32) {
    %c0_i32 = arith.constant 0 : i32
    %c0_i32_0 = arith.constant 0 : i32
    return %arg0, %c0_i32, %arg1 : i32, i32, i32
  }
  func.func @transform_4(%arg0: i32, %arg1: i32) -> (i32, i32, i32) {
    %c0_i32 = arith.constant 0 : i32
    %c0_i32_0 = arith.constant 0 : i32
    return %arg0, %c0_i32, %arg1 : i32, i32, i32
  }
}

module attributes {stable_mosaic.version = 11 : i64} {
  func.func @_conv_stats_kernel(%arg0: i32, %arg1: i32, %arg2: memref<576x256xbf16, #tpu.memory_space<vmem>>, %arg3: memref<256x16xbf16, #tpu.memory_space<vmem>>, %arg4: memref<576x16xbf16, #tpu.memory_space<vmem>>, %arg5: memref<1x1x16xf32, #tpu.memory_space<vmem>>, %arg6: memref<1x1x16xf32, #tpu.memory_space<vmem>>) attributes {dimension_semantics = [#tpu.dimension_semantics<parallel>, #tpu.dimension_semantics<parallel>], iteration_bounds = array<i64: 2, 1>, scalar_prefetch = 0 : i64, scratch_operands = 0 : i64, tpu.core_type = #tpu.core_type<tc>, window_params = [{transform_indices = @transform_0, window_bounds = array<i64: 576, 256>}, {transform_indices = @transform_1, window_bounds = array<i64: 256, 16>}, {transform_indices = @transform_2, window_bounds = array<i64: 576, 16>}, {transform_indices = @transform_3, window_bounds = array<i64: 1, 1, 16>}, {transform_indices = @transform_4, window_bounds = array<i64: 1, 1, 16>}]} {
    %c0 = arith.constant 0 : index
    %c0_0 = arith.constant 0 : index
    %0 = vector.load %arg2[%c0, %c0_0] : memref<576x256xbf16, #tpu.memory_space<vmem>>, vector<576x256xbf16>
    %c0_1 = arith.constant 0 : index
    %c0_2 = arith.constant 0 : index
    %1 = vector.load %arg3[%c0_1, %c0_2] : memref<256x16xbf16, #tpu.memory_space<vmem>>, vector<256x16xbf16>
    %cst = arith.constant dense<0.000000e+00> : vector<576x16xf32>
    %2 = tpu.matmul %0, %1, %cst {dimension_numbers = #tpu.dot_dimension_numbers<[1], [0], [0], [1], [0, 0, 1, 1], [], []>} : vector<576x256xbf16>, vector<256x16xbf16>, vector<576x16xf32> -> vector<576x16xf32>
    %3 = arith.truncf %2 : vector<576x16xf32> to vector<576x16xbf16>
    %c0_3 = arith.constant 0 : index
    %c0_4 = arith.constant 0 : index
    %4 = vector.load %arg4[%c0_3, %c0_4] : memref<576x16xbf16, #tpu.memory_space<vmem>>, vector<576x16xbf16>
    tpu.vector_store %arg4[%c0_3, %c0_4], %3 {strides = array<i32>} : memref<576x16xbf16, #tpu.memory_space<vmem>>, vector<576x16xbf16>,
    %cst_5 = arith.constant dense<0.000000e+00> : vector<16xf32>
    %5 = vector.multi_reduction <add>, %2, %cst_5 [0] : vector<576x16xf32> to vector<16xf32>
    %6 = vector.shape_cast %5 : vector<16xf32> to vector<1x16xf32>
    %c0_6 = arith.constant 0 : index
    %c0_7 = arith.constant 0 : index
    %c0_8 = arith.constant 0 : index
    %7 = vector.load %arg5[%c0_6, %c0_7, %c0_8] : memref<1x1x16xf32, #tpu.memory_space<vmem>>, vector<1x1x16xf32>
    %8 = vector.shape_cast %7 : vector<1x1x16xf32> to vector<1x16xf32>
    %9 = vector.shape_cast %6 : vector<1x16xf32> to vector<1x1x16xf32>
    tpu.vector_store %arg5[%c0_6, %c0_7, %c0_8], %9 {strides = array<i32>} : memref<1x1x16xf32, #tpu.memory_space<vmem>>, vector<1x1x16xf32>,
    %10 = arith.mulf %2, %2 : vector<576x16xf32>
    %cst_9 = arith.constant dense<0.000000e+00> : vector<16xf32>
    %11 = vector.multi_reduction <add>, %10, %cst_9 [0] : vector<576x16xf32> to vector<16xf32>
    %12 = vector.shape_cast %11 : vector<16xf32> to vector<1x16xf32>
    %c0_10 = arith.constant 0 : index
    %c0_11 = arith.constant 0 : index
    %c0_12 = arith.constant 0 : index
    %13 = vector.load %arg6[%c0_10, %c0_11, %c0_12] : memref<1x1x16xf32, #tpu.memory_space<vmem>>, vector<1x1x16xf32>
    %14 = vector.shape_cast %13 : vector<1x1x16xf32> to vector<1x16xf32>
    %15 = vector.shape_cast %12 : vector<1x16xf32> to vector<1x1x16xf32>
    tpu.vector_store %arg6[%c0_10, %c0_11, %c0_12], %15 {strides = array<i32>} : memref<1x1x16xf32, #tpu.memory_space<vmem>>, vector<1x1x16xf32>,
    return
  }
  func.func @transform_0(%arg0: i32, %arg1: i32) -> (i32, i32) {
    %c0_i32 = arith.constant 0 : i32
    %c0_i32_0 = arith.constant 0 : i32
    return %arg0, %c0_i32 : i32, i32
  }
  func.func @transform_1(%arg0: i32, %arg1: i32) -> (i32, i32) {
    %c0_i32 = arith.constant 0 : i32
    %c0_i32_0 = arith.constant 0 : i32
    return %c0_i32, %arg1 : i32, i32
  }
  func.func @transform_2(%arg0: i32, %arg1: i32) -> (i32, i32) {
    %c0_i32 = arith.constant 0 : i32
    return %arg0, %arg1 : i32, i32
  }
  func.func @transform_3(%arg0: i32, %arg1: i32) -> (i32, i32, i32) {
    %c0_i32 = arith.constant 0 : i32
    %c0_i32_0 = arith.constant 0 : i32
    return %arg0, %c0_i32, %arg1 : i32, i32, i32
  }
  func.func @transform_4(%arg0: i32, %arg1: i32) -> (i32, i32, i32) {
    %c0_i32 = arith.constant 0 : i32
    %c0_i32_0 = arith.constant 0 : i32
    return %arg0, %c0_i32, %arg1 : i32, i32, i32
  }
}

</mosaic_0001>

<bundles_post_ra>
// kernel: _lambda_.2
= control target key start
LH: loop header
LB: loop body
LE: loop exit
PB: predicated region body
PF: predicated region fallthrough
CT: control target
= control target key end

     0   :  { %s2303_s15 = smov 0   ;;  %s2305_s16 = smov 0   ;;  %s2958_s0 = inlined_call_operand.vmem [shape: bf16[1152,128], index: 0, kind: input, shape index: {}]   ;;  %s2959_s1 = inlined_call_operand.vmem [shape: bf16[128,16], index: 1, kind: input, shape index: {}]   ;;  %s2960_s2 = inlined_call_operand.vmem [shape: bf16[1152,16], index: 2, kind: output, shape index: {0}]   ;;  %s2961_s3 = inlined_call_operand.vmem [shape: f32[2,1,16], index: 3, kind: output, shape index: {1}]   ;;  %s2962_s4 = inlined_call_operand.vmem [shape: f32[2,1,16], index: 4, kind: output, shape index: {2}]  }
   0x1   :  { %s2307_s17 = smov 0  }
   0x2 LB: > { %s27_s18 = sadd.s32 1, %s2272_s16  ;;  %p1845_p0 = scmp.ge.s32.totalorder %s2276_s17, 1  ;;  %s2276_s17 = sphi %s2307_s17, %s15_s17   ;;  %s2272_s16 = sphi %s2305_s16, %s2964_s16   ;;  %s2268_s15 = sphi %s2303_s15, %s2963_s15  }
   0x3   : > { %p29_p1 = scmp.ge.s32.totalorder %s27_s18, 2  ;;  %p195_p2 = scmp.lt.s32.totalorder %s2276_s17, 3 }
   0x5   : > { %s2966_s18 = smov (%p29_p1, %s27_s18), 0  ;;  %p196_p3 = pnand %p1845_p0, %p195_p2 }
   0x6   : > { %v2210_v0 = vld [vmem:[%s2959_s1] sm:$0xff] (!%p196_p3)   ;;  %s240_s21 = smul.u32 (!%p196_p3), 72, %s2268_s15  ;;  %v2211_v1 = vld [vmem:[%s2959_s1 + $0x8] sm:$0xff] (!%p196_p3)   ;;  %v2212_v2 = vld [vmem:[%s2959_s1 + $0x10] sm:$0xff] (!%p196_p3)   ;;  %vm1233_vm0 = vcmask (!%p196_p3), 125952   ;;  %vm1306_vm1 = vcmask (!%p196_p3), 130048  }
   0x7   : > { %199 = sbr.rel (%p196_p3) target bundleno = 412 (0x19c), region = 28  ;;  %2082 = vmatprep.subr.bf16.mxu0 (!%p196_p3), %v2210_v0  ;;  %2170 = vmatprep.subr.bf16.mxu1 (!%p196_p3), %v2210_v0  ;;  %v2213_v3 = vld [vmem:[%s2959_s1 + $0x18] sm:$0xff] (!%p196_p3)   ;;  %v2214_v5 = vld [vmem:[%s2959_s1 + $0x20] sm:$0xff] (!%p196_p3)   ;;  %v2215_v6 = vld [vmem:[%s2959_s1 + $0x28] sm:$0xff] (!%p196_p3)   ;;  %p259_p5 = scmp.lt.s32.totalorder (!%p196_p3), %s2268_s15, 1  ;;  %vm1456_vm2 = vcmask (!%p196_p3), 122880  }
   0x8   : > { %p241_p4 = scmp.lt.s32.totalorder (!%p196_p3), %s240_s21, 143  ;;  %2083 = vmatpush3.bf16.msra.mxu0 (!%p196_p3), %v2210_v0  ;;  %2178 = vmatpush3.bf16.msra.mxu1 (!%p196_p3), %v2210_v0  ;;  %v2216_v7 = vld [vmem:[%s2959_s1 + $0x30] sm:$0xff] (!%p196_p3)   ;;  %v2217_v8 = vld [vmem:[%s2959_s1 + $0x38] sm:$0xff] (!%p196_p3)  }
   0x9   : > { %2084 = vmatprep.subr.bf16.mxu0 (!%p196_p3), %v2211_v1  ;;  %2171 = vmatprep.subr.bf16.mxu1 (!%p196_p3), %v2211_v1 }
   0xc   : > { %2085 = vmatpush3.bf16.msra.mxu0 (!%p196_p3), %v2211_v1  ;;  %2179 = vmatpush3.bf16.msra.mxu1 (!%p196_p3), %v2211_v1 }
   0xd   : > { %2086 = vmatprep.subr.bf16.mxu0 (!%p196_p3), %v2212_v2  ;;  %2172 = vmatprep.subr.bf16.mxu1 (!%p196_p3), %v2212_v2 }
   0xe   : > { %s2968_s21 = smov (!%p241_p4, %s240_s21), 143  ;;  %s2970_s15 = smov (!%p259_p5, %s2268_s15), 1 }
   0xf   : > { %s1846_s26 = sshll.u32 %s2968_s21, 2  ;;  %s264_s23 = scalar_lea.vmem %s2961_s3, %s2970_s15 }
  0x10   : > { %s2344_s5 = scalar_lea.vmem %s2958_s0, %s1846_s26  ;;  %2087 = vmatpush3.bf16.msra.mxu0 %v2212_v2  ;;  %2180 = vmatpush3.bf16.msra.mxu1 %v2212_v2  ;;  %s2399_s20 = scalar_lea.vmem %s2960_s2, %s1846_s26 }
  0x11   : > { %v2218_v4 = vld [vmem:[%s2344_s5] sm:$0xff]   ;;  %2088 = vmatprep.subr.bf16.mxu0 %v2213_v3  ;;  %2173 = vmatprep.subr.bf16.mxu1 %v2213_v3  ;;  %v2236_v9 = vld [vmem:[%s2344_s5 + $0x90] sm:$0xff]   ;;  %v2219_v10 = vld [vmem:[%s2344_s5 + $0x8] sm:$0xff]   ;;  %s270_s26 = scalar_lea.vmem %s2962_s4, %s2970_s15 }
  0x12   : > { %2098 = vmatprep.mubr.bf16.mxu0 %v2218_v4  ;;  %v2220_v11 = vld [vmem:[%s2344_s5 + $0x10] sm:$0xff]   ;;  %2134 = vmatprep.mubr.bf16.mxu1 %v2236_v9  ;;  %v2237_v12 = vld [vmem:[%s2344_s5 + $0x98] sm:$0xff]   ;;  %v2238_v13 = vld [vmem:[%s2344_s5 + $0xa0] sm:$0xff]  }
  0x13   : > { %v2221_v14 = vld [vmem:[%s2344_s5 + $0x18] sm:$0xff]   ;;  %v2222_v15 = vld [vmem:[%s2344_s5 + $0x20] sm:$0xff]   ;;  %v2239_v16 = vld [vmem:[%s2344_s5 + $0xa8] sm:$0xff]  }
  0x14   : > { %2089 = vmatpush3.bf16.msra.mxu0 %v2213_v3  ;;  %2181 = vmatpush3.bf16.msra.mxu1 %v2213_v3  ;;  %v2240_v17 = vld [vmem:[%s2344_s5 + $0xb0] sm:$0xff]   ;;  %v2223_v18 = vld [vmem:[%s2344_s5 + $0x28] sm:$0xff]   ;;  %v2241_v19 = vld [vmem:[%s2344_s5 + $0xb8] sm:$0xff]  }
  0x15   : > { %2090 = vmatprep.subr.bf16.mxu0 %v2214_v5  ;;  %2174 = vmatprep.subr.bf16.mxu1 %v2214_v5  ;;  %v2224_v20 = vld [vmem:[%s2344_s5 + $0x30] sm:$0xff]   ;;  %v2242_v21 = vld [vmem:[%s2344_s5 + $0xc0] sm:$0xff]   ;;  %v2225_v22 = vld [vmem:[%s2344_s5 + $0x38] sm:$0xff]  }
  0x16   : > { %v2243_v23 = vld [vmem:[%s2344_s5 + $0xc8] sm:$0xff]   ;;  %v2226_v24 = vld [vmem:[%s2344_s5 + $0x40] sm:$0xff]   ;;  %v2244_v25 = vld [vmem:[%s2344_s5 + $0xd0] sm:$0xff]  }
  0x17   : > { %v2227_v26 = vld [vmem:[%s2344_s5 + $0x48] sm:$0xff]   ;;  %v2245_v27 = vld [vmem:[%s2344_s5 + $0xd8] sm:$0xff]   ;;  %v2228_v28 = vld [vmem:[%s2344_s5 + $0x50] sm:$0xff]  }
  0x18   : > { %2091 = vmatpush3.bf16.msra.mxu0 %v2214_v5  ;;  %2182 = vmatpush3.bf16.msra.mxu1 %v2214_v5  ;;  %v2246_v29 = vld [vmem:[%s2344_s5 + $0xe0] sm:$0xff]   ;;  %v2229_v30 = vld [vmem:[%s2344_s5 + $0x58] sm:$0xff]   ;;  %v2247_v31 = vld [vmem:[%s2344_s5 + $0xe8] sm:$0xff]  }
  0x19   : > { %2092 = vmatprep.subr.bf16.mxu0 %v2215_v6  ;;  %2175 = vmatprep.subr.bf16.mxu1 %v2215_v6  ;;  %v2230_v32 = vld [vmem:[%s2344_s5 + $0x60] sm:$0xff]   ;;  %v2248_v33 = vld [vmem:[%s2344_s5 + $0xf0] sm:$0xff]   ;;  %v2231_v34 = vld [vmem:[%s2344_s5 + $0x68] sm:$0xff]  }
  0x1a   : > { %v2249_v35 = vld [vmem:[%s2344_s5 + $0xf8] sm:$0xff]   ;;  %v2232_v36 = vld [vmem:[%s2344_s5 + $0x70] sm:$0xff]   ;;  %v2250_v37 = vld [vmem:[%s2344_s5 + $0x100] sm:$0xff]  }
  0x1b   : > { %v2233_v38 = vld [vmem:[%s2344_s5 + $0x78] sm:$0xff]   ;;  %v2251_v39 = vld [vmem:[%s2344_s5 + $0x108] sm:$0xff]   ;;  %v2234_v40 = vld [vmem:[%s2344_s5 + $0x80] sm:$0xff]  }
  0x1c   : > { %2093 = vmatpush3.bf16.msra.mxu0 %v2215_v6  ;;  %2183 = vmatpush3.bf16.msra.mxu1 %v2215_v6  ;;  %v2252_v41 = vld [vmem:[%s2344_s5 + $0x110] sm:$0xff]   ;;  %v2235_v42 = vld [vmem:[%s2344_s5 + $0x88] sm:$0xff]   ;;  %v2253_v43 = vld [vmem:[%s2344_s5 + $0x118] sm:$0xff]  }
  0x1d   : > { %2094 = vmatprep.subr.bf16.mxu0 %v2216_v7  ;;  %2176 = vmatprep.subr.bf16.mxu1 %v2216_v7 }
  0x20   : > { %2095 = vmatpush3.bf16.msra.mxu0 %v2216_v7  ;;  %2184 = vmatpush3.bf16.msra.mxu1 %v2216_v7 }
  0x21   : > { %2096 = vmatprep.subr.bf16.mxu0 %v2217_v8  ;;  %2177 = vmatprep.subr.bf16.mxu1 %v2217_v8 }
  0x24   : > { %2097 = vmatpush3.bf16.msra.mxu0 %v2217_v8  ;;  %2185 = vmatpush3.bf16.msra.mxu1 %v2217_v8 }
  0x27   : > { %2099 = vmatmul.mubr.bf16.vlgmr.msra.gmra.mrb[0].mxu0 %v2219_v10  ;;  %2135 = vmatmul.mubr.bf16.vlgmr.msra.gmra.mrb[0].mxu1 %v2237_v12 }
  0x28   : > { %2102 = vmatprep.mubr.bf16.mxu0 %v2220_v11  ;;  %2138 = vmatprep.mubr.bf16.mxu1 %v2238_v13 }
  0x2f   : > { %2103 = vmatmul.mubr.bf16.gmra.mrb[4].mxu0 %v2221_v14  ;;  %2139 = vmatmul.mubr.bf16.gmra.mrb[4].mxu1 %v2239_v16 }
  0x30   : > { %2106 = vmatprep.mubr.bf16.mxu0 %v2222_v15  ;;  %2142 = vmatprep.mubr.bf16.mxu1 %v2240_v17 }
  0x37   : > { %2107 = vmatmul.mubr.bf16.gmra.mrb[8].mxu0 %v2223_v18  ;;  %2143 = vmatmul.mubr.bf16.gmra.mrb[8].mxu1 %v2241_v19 }
  0x38   : > { %2110 = vmatprep.mubr.bf16.mxu0 %v2224_v20  ;;  %2146 = vmatprep.mubr.bf16.mxu1 %v2242_v21 }
  0x3f   : > { %2111 = vmatmul.mubr.bf16.gmra.mrb[12].mxu0 %v2225_v22  ;;  %2147 = vmatmul.mubr.bf16.gmra.mrb[12].mxu1 %v2243_v23 }
  0x40   : > { %2114 = vmatprep.mubr.bf16.mxu0 %v2226_v24  ;;  %2150 = vmatprep.mubr.bf16.mxu1 %v2244_v25 }
  0x47   : > { %2115 = vmatmul.mubr.bf16.gmra.mrb[16].mxu0 %v2227_v26  ;;  %2151 = vmatmul.mubr.bf16.gmra.mrb[16].mxu1 %v2245_v27 }
  0x48   : > { %2118 = vmatprep.mubr.bf16.mxu0 %v2228_v28  ;;  %2154 = vmatprep.mubr.bf16.mxu1 %v2246_v29 }
  0x4f   : > { %2119 = vmatmul.mubr.bf16.gmra.mrb[20].mxu0 %v2229_v30  ;;  %2155 = vmatmul.mubr.bf16.gmra.mrb[20].mxu1 %v2247_v31 }
  0x50   : > { %2122 = vmatprep.mubr.bf16.mxu0 %v2230_v32  ;;  %2158 = vmatprep.mubr.bf16.mxu1 %v2248_v33 }
  0x57   : > { %2123 = vmatmul.mubr.bf16.gmra.mrb[24].mxu0 %v2231_v34  ;;  %2159 = vmatmul.mubr.bf16.gmra.mrb[24].mxu1 %v2249_v35 }
  0x58   : > { %2126 = vmatprep.mubr.bf16.mxu0 %v2232_v36  ;;  %2162 = vmatprep.mubr.bf16.mxu1 %v2250_v37 }
  0x5f   : > { %2127 = vmatmul.mubr.bf16.gmra.mrb[28].mxu0 %v2233_v38  ;;  %2163 = vmatmul.mubr.bf16.gmra.mrb[28].mxu1 %v2251_v39 }
  0x60   : > { %2130 = vmatprep.mubr.bf16.mxu0 %v2234_v40  ;;  %2166 = vmatprep.mubr.bf16.mxu1 %v2252_v41 }
  0x67   : > { %2131 = vmatmul.mubr.bf16.gmra.mrb[32].mxu0 %v2235_v42  ;;  %2167 = vmatmul.mubr.bf16.gmra.mrb[32].mxu1 %v2253_v43 }
  0xfa   : > { %v2100_v44 = vpop.f32.mrb[0].mxu0  ;;  %v2401_v45 = vpop.f32.mrb[0].mxu1 }
  0xfb   : > { %v1968_v46 = vpack.c.bf16 %v2100_v44, %v2100_v44  ;;  %v658_v47 = vpop.f32.mrb[1].mxu0  ;;  %v2004_v48 = vpack.c.bf16 %v2401_v45, %v2401_v45  ;;  %v2405_v49 = vpop.f32.mrb[1].mxu1  ;;  %v1460_v54 = vmul.f32 %v2100_v44, %v2100_v44  ;;  %v1310_v1 = vsel %vm1306_vm1, %v2100_v44, 0.0 }
  0xfc   : > { %v1966_v50 = vpack.c.bf16 %v658_v47, %v658_v47  ;;  %v1458_v51 = vmul.f32 %v658_v47, %v658_v47  ;;  %v2101_v52 = vpop.f32.mrb[2].mxu0  ;;  %v2407_v53 = vpop.f32.mrb[2].mxu1  ;;  %v1307_v58 = vsel %vm1306_vm1, %v658_v47, 0.0  ;;  %v2002_v0 = vpack.c.bf16 %v2405_v49, %v2405_v49 }
  0xfd   : > { %1236 = vst.msk [vmem:[%s2399_s20 + $0x8] sm:$0xf] %vm1233_vm0, %v1968_v46  ;;  %v1969_v55 = vpack.c.bf16 %v2101_v52, %v2101_v52  ;;  %v661_v56 = vpop.f32.mrb[3].mxu0  ;;  %1272 = vst.msk [vmem:[%s2399_s20 + $0x98] sm:$0xf] %vm1233_vm0, %v2004_v48  ;;  %v2413_v57 = vpop.f32.mrb[3].mxu1  ;;  %v1461_v62 = vmul.f32 %v2101_v52, %v2101_v52  ;;  %v2005_v4 = vpack.c.bf16 %v2407_v53, %v2407_v53 }
  0xfe   : > { %1234 = vst.msk [vmem:[%s2399_s20] sm:$0xf] %vm1233_vm0, %v1966_v50  ;;  %v1967_v59 = vpack.c.bf16 %v661_v56, %v661_v56  ;;  %v1308_v60 = vsel %vm1306_vm1, %v661_v56, 0.0  ;;  %v1459_v61 = vmul.f32 %v661_v56, %v661_v56  ;;  %v1530_v2 = vsel %vm1306_vm1, %v1458_v51, 0.0  ;;  %1270 = vst.msk [vmem:[%s2399_s20 + $0x90] sm:$0xf] %vm1233_vm0, %v2002_v0 }
  0xff   : > { %1237 = vst.msk [vmem:[%s2399_s20 + $0xc] sm:$0xf] %vm1233_vm0, %v1969_v55  ;;  %v1309_v63 = vadd.f32 %v1308_v60, %v1307_v58  ;;  %v1533_v7 = vsel %vm1306_vm1, %v1460_v54, 0.0  ;;  %1273 = vst.msk [vmem:[%s2399_s20 + $0x9c] sm:$0xf] %vm1233_vm0, %v2005_v4  ;;  %v2003_v9 = vpack.c.bf16 %v2413_v57, %v2413_v57  ;;  %v1312_v11 = vsel %vm1306_vm1, %v2101_v52, 0.0 }
 0x100   : > { %1235 = vst.msk [vmem:[%s2399_s20 + $0x4] sm:$0xf] %vm1233_vm0, %v1967_v59  ;;  %v1531_v3 = vsel %vm1306_vm1, %v1459_v61, 0.0  ;;  %v1535_v12 = vsel %vm1306_vm1, %v1461_v62, 0.0 }
 0x101   : > { %v1311_v5 = vadd.f32 %v1310_v1, %v1309_v63  ;;  %v1532_v6 = vadd.f32 %v1531_v3, %v1530_v2  ;;  %1271 = vst.msk [vmem:[%s2399_s20 + $0x94] sm:$0xf] %vm1233_vm0, %v2003_v9 }
 0x102   : > { %v2104_v8 = vpop.f32.mrb[4].mxu0  ;;  %v2437_v10 = vpop.f32.mrb[4].mxu1 }
 0x103   : > { %v1534_v13 = vadd.f32 %v1533_v7, %v1532_v6  ;;  %v1972_v14 = vpack.c.bf16 %v2104_v8, %v2104_v8  ;;  %v674_v15 = vpop.f32.mrb[5].mxu0  ;;  %v2441_v16 = vpop.f32.mrb[5].mxu1  ;;  %v1313_v18 = vadd.f32 %v1312_v11, %v1311_v5  ;;  %v1464_v30 = vmul.f32 %v2104_v8, %v2104_v8 }
 0x104   : > { %v1970_v17 = vpack.c.bf16 %v674_v15, %v674_v15  ;;  %v1314_v19 = vsel %vm1306_vm1, %v674_v15, 0.0  ;;  %v1462_v20 = vmul.f32 %v674_v15, %v674_v15  ;;  %v2105_v21 = vpop.f32.mrb[6].mxu0  ;;  %v2446_v22 = vpop.f32.mrb[6].mxu1  ;;  %v2008_v35 = vpack.c.bf16 %v2437_v10, %v2437_v10 }
 0x105   : > { %1240 = vst.msk [vmem:[%s2399_s20 + $0x18] sm:$0xf] %vm1233_vm0, %v1972_v14  ;;  %v1536_v23 = vadd.f32 %v1535_v12, %v1534_v13  ;;  %v1973_v24 = vpack.c.bf16 %v2105_v21, %v2105_v21  ;;  %v677_v25 = vpop.f32.mrb[7].mxu0  ;;  %v2450_v26 = vpop.f32.mrb[7].mxu1  ;;  %v1315_v27 = vadd.f32 %v1314_v19, %v1313_v18  ;;  %v1318_v36 = vsel %vm1306_vm1, %v2104_v8, 0.0 }
 0x106   : > { %1238 = vst.msk [vmem:[%s2399_s20 + $0x10] sm:$0xf] %vm1233_vm0, %v1970_v17  ;;  %v1537_v28 = vsel %vm1306_vm1, %v1462_v20, 0.0  ;;  %v1971_v29 = vpack.c.bf16 %v677_v25, %v677_v25  ;;  %v1316_v32 = vsel %vm1306_vm1, %v677_v25, 0.0  ;;  %v1463_v33 = vmul.f32 %v677_v25, %v677_v25  ;;  %1276 = vst.msk [vmem:[%s2399_s20 + $0xa8] sm:$0xf] %vm1233_vm0, %v2008_v35 }
 0x107   : > { %v1538_v31 = vadd.f32 %v1537_v28, %v1536_v23  ;;  %1241 = vst.msk [vmem:[%s2399_s20 + $0x1c] sm:$0xf] %vm1233_vm0, %v1973_v24  ;;  %v1317_v34 = vadd.f32 %v1316_v32, %v1315_v27  ;;  %v1465_v37 = vmul.f32 %v2105_v21, %v2105_v21  ;;  %v2006_v39 = vpack.c.bf16 %v2441_v16, %v2441_v16 }
 0x108   : > { %1239 = vst.msk [vmem:[%s2399_s20 + $0x14] sm:$0xf] %vm1233_vm0, %v1971_v29  ;;  %v1539_v38 = vsel %vm1306_vm1, %v1463_v33, 0.0  ;;  %v1541_v44 = vsel %vm1306_vm1, %v1464_v30, 0.0  ;;  %v1320_v46 = vsel %vm1306_vm1, %v2105_v21, 0.0  ;;  %v2009_v9 = vpack.c.bf16 %v2446_v22, %v2446_v22 }
 0x109   : > { %v1319_v40 = vadd.f32 %v1318_v36, %v1317_v34  ;;  %v1540_v41 = vadd.f32 %v1539_v38, %v1538_v31  ;;  %1274 = vst.msk [vmem:[%s2399_s20 + $0xa0] sm:$0xf] %vm1233_vm0, %v2006_v39  ;;  %v1543_v59 = vsel %vm1306_vm1, %v1465_v37, 0.0  ;;  %v2007_v18 = vpack.c.bf16 %v2450_v26, %v2450_v26 }
 0x10a   : > { %v2108_v42 = vpop.f32.mrb[8].mxu0  ;;  %v2468_v43 = vpop.f32.mrb[8].mxu1  ;;  %1277 = vst.msk [vmem:[%s2399_s20 + $0xac] sm:$0xf] %vm1233_vm0, %v2009_v9 }
 0x10b   : > { %v1976_v47 = vpack.c.bf16 %v2108_v42, %v2108_v42  ;;  %v690_v48 = vpop.f32.mrb[9].mxu0  ;;  %v2474_v50 = vpop.f32.mrb[9].mxu1  ;;  %v1542_v51 = vadd.f32 %v1541_v44, %v1540_v41  ;;  %v1321_v54 = vadd.f32 %v1320_v46, %v1319_v40  ;;  %v1468_v3 = vmul.f32 %v2108_v42, %v2108_v42  ;;  %1275 = vst.msk [vmem:[%s2399_s20 + $0xa4] sm:$0xf] %vm1233_vm0, %v2007_v18 }
 0x10c   : > { %v1974_v52 = vpack.c.bf16 %v690_v48, %v690_v48  ;;  %v1322_v55 = vsel %vm1306_vm1, %v690_v48, 0.0  ;;  %v2109_v56 = vpop.f32.mrb[10].mxu0  ;;  %v2477_v58 = vpop.f32.mrb[10].mxu1  ;;  %v1466_v60 = vmul.f32 %v690_v48, %v690_v48  ;;  %v1326_v11 = vsel %vm1306_vm1, %v2108_v42, 0.0 }
 0x10d   : > { %1244 = vst.msk [vmem:[%s2399_s20 + $0x28] sm:$0xf] %vm1233_vm0, %v1976_v47  ;;  %v1977_v61 = vpack.c.bf16 %v2109_v56, %v2109_v56  ;;  %v693_v62 = vpop.f32.mrb[11].mxu0  ;;  %v2482_v63 = vpop.f32.mrb[11].mxu1  ;;  %v1323_v0 = vadd.f32 %v1322_v55, %v1321_v54  ;;  %v1544_v1 = vadd.f32 %v1543_v59, %v1542_v51  ;;  %v1469_v12 = vmul.f32 %v2109_v56, %v2109_v56 }
 0x10e   : > { %1242 = vst.msk [vmem:[%s2399_s20 + $0x20] sm:$0xf] %vm1233_vm0, %v1974_v52  ;;  %v1975_v2 = vpack.c.bf16 %v693_v62, %v693_v62  ;;  %v1545_v4 = vsel %vm1306_vm1, %v1466_v60, 0.0  ;;  %v1324_v5 = vsel %vm1306_vm1, %v693_v62, 0.0  ;;  %v1467_v6 = vmul.f32 %v693_v62, %v693_v62 }
 0x10f   : > { %1245 = vst.msk [vmem:[%s2399_s20 + $0x2c] sm:$0xf] %vm1233_vm0, %v1977_v61  ;;  %v1546_v7 = vadd.f32 %v1545_v4, %v1544_v1  ;;  %v1325_v8 = vadd.f32 %v1324_v5, %v1323_v0  ;;  %v1549_v20 = vsel %vm1306_vm1, %v1468_v3, 0.0  ;;  %v1328_v21 = vsel %vm1306_vm1, %v2109_v56, 0.0 }
 0x110   : > { %1243 = vst.msk [vmem:[%s2399_s20 + $0x24] sm:$0xf] %vm1233_vm0, %v1975_v2  ;;  %v1547_v13 = vsel %vm1306_vm1, %v1467_v6, 0.0  ;;  %v1551_v33 = vsel %vm1306_vm1, %v1469_v12, 0.0  ;;  %v2012_v51 = vpack.c.bf16 %v2468_v43, %v2468_v43  ;;  %v2010_v61 = vpack.c.bf16 %v2474_v50, %v2474_v50 }
 0x111   : > { %v1327_v14 = vadd.f32 %v1326_v11, %v1325_v8  ;;  %v1548_v15 = vadd.f32 %v1547_v13, %v1546_v7 }
 0x112   : > { %v2112_v17 = vpop.f32.mrb[12].mxu0  ;;  %v2500_v19 = vpop.f32.mrb[12].mxu1  ;;  %1280 = vst.msk [vmem:[%s2399_s20 + $0xb8] sm:$0xf] %vm1233_vm0, %v2012_v51  ;;  %1278 = vst.msk [vmem:[%s2399_s20 + $0xb0] sm:$0xf] %vm1233_vm0, %v2010_v61 }
 0x113   : > { %v1980_v23 = vpack.c.bf16 %v2112_v17, %v2112_v17  ;;  %v706_v24 = vpop.f32.mrb[13].mxu0  ;;  %v2504_v25 = vpop.f32.mrb[13].mxu1  ;;  %v1550_v27 = vadd.f32 %v1549_v20, %v1548_v15  ;;  %v1329_v29 = vadd.f32 %v1328_v21, %v1327_v14  ;;  %v1472_v41 = vmul.f32 %v2112_v17, %v2112_v17 }
 0x114   : > { %v1978_v28 = vpack.c.bf16 %v706_v24, %v706_v24  ;;  %v1330_v30 = vsel %vm1306_vm1, %v706_v24, 0.0  ;;  %v2113_v31 = vpop.f32.mrb[14].mxu0  ;;  %v2509_v32 = vpop.f32.mrb[14].mxu1  ;;  %v1470_v34 = vmul.f32 %v706_v24, %v706_v24  ;;  %v1334_v52 = vsel %vm1306_vm1, %v2112_v17, 0.0 }
 0x115   : > { %1248 = vst.msk [vmem:[%s2399_s20 + $0x38] sm:$0xf] %vm1233_vm0, %v1980_v23  ;;  %v1981_v35 = vpack.c.bf16 %v2113_v31, %v2113_v31  ;;  %v709_v36 = vpop.f32.mrb[15].mxu0  ;;  %v2514_v37 = vpop.f32.mrb[15].mxu1  ;;  %v1331_v38 = vadd.f32 %v1330_v30, %v1329_v29  ;;  %v1552_v39 = vadd.f32 %v1551_v33, %v1550_v27  ;;  %v1473_v54 = vmul.f32 %v2113_v31, %v2113_v31 }
 0x116   : > { %1246 = vst.msk [vmem:[%s2399_s20 + $0x30] sm:$0xf] %vm1233_vm0, %v1978_v28  ;;  %v1979_v40 = vpack.c.bf16 %v709_v36, %v709_v36  ;;  %v1553_v42 = vsel %vm1306_vm1, %v1470_v34, 0.0  ;;  %v1332_v44 = vsel %vm1306_vm1, %v709_v36, 0.0  ;;  %v1471_v46 = vmul.f32 %v709_v36, %v709_v36 }
 0x117   : > { %1249 = vst.msk [vmem:[%s2399_s20 + $0x3c] sm:$0xf] %vm1233_vm0, %v1981_v35  ;;  %v1554_v47 = vadd.f32 %v1553_v42, %v1552_v39  ;;  %v1333_v48 = vadd.f32 %v1332_v44, %v1331_v38  ;;  %v1557_v0 = vsel %vm1306_vm1, %v1472_v41, 0.0  ;;  %v1336_v1 = vsel %vm1306_vm1, %v2113_v31, 0.0 }
 0x118   : > { %1247 = vst.msk [vmem:[%s2399_s20 + $0x34] sm:$0xf] %vm1233_vm0, %v1979_v40  ;;  %v1555_v55 = vsel %vm1306_vm1, %v1471_v46, 0.0  ;;  %v1559_v12 = vsel %vm1306_vm1, %v1473_v54, 0.0  ;;  %v2013_v31 = vpack.c.bf16 %v2477_v58, %v2477_v58  ;;  %v2011_v40 = vpack.c.bf16 %v2482_v63, %v2482_v63 }
 0x119   : > { %v1335_v56 = vadd.f32 %v1334_v52, %v1333_v48  ;;  %v1556_v59 = vadd.f32 %v1555_v55, %v1554_v47 }
 0x11a   : > { %v2116_v60 = vpop.f32.mrb[16].mxu0  ;;  %v2532_v62 = vpop.f32.mrb[16].mxu1  ;;  %1281 = vst.msk [vmem:[%s2399_s20 + $0xbc] sm:$0xf] %vm1233_vm0, %v2013_v31  ;;  %1279 = vst.msk [vmem:[%s2399_s20 + $0xb4] sm:$0xf] %vm1233_vm0, %v2011_v40 }
 0x11b   : > { %v1984_v2 = vpack.c.bf16 %v2116_v60, %v2116_v60  ;;  %v722_v3 = vpop.f32.mrb[17].mxu0  ;;  %v2536_v4 = vpop.f32.mrb[17].mxu1  ;;  %v1558_v5 = vadd.f32 %v1557_v0, %v1556_v59  ;;  %v1337_v7 = vadd.f32 %v1336_v1, %v1335_v56  ;;  %v1476_v23 = vmul.f32 %v2116_v60, %v2116_v60 }
 0x11c   : > { %v1982_v6 = vpack.c.bf16 %v722_v3, %v722_v3  ;;  %v1338_v8 = vsel %vm1306_vm1, %v722_v3, 0.0  ;;  %v2117_v9 = vpop.f32.mrb[18].mxu0  ;;  %v2541_v11 = vpop.f32.mrb[18].mxu1  ;;  %v1474_v13 = vmul.f32 %v722_v3, %v722_v3  ;;  %v1342_v33 = vsel %vm1306_vm1, %v2116_v60, 0.0 }
 0x11d   : > { %1252 = vst.msk [vmem:[%s2399_s20 + $0x48] sm:$0xf] %vm1233_vm0, %v1984_v2  ;;  %v1985_v14 = vpack.c.bf16 %v2117_v9, %v2117_v9  ;;  %v725_v15 = vpop.f32.mrb[19].mxu0  ;;  %v2546_v17 = vpop.f32.mrb[19].mxu1  ;;  %v1339_v18 = vadd.f32 %v1338_v8, %v1337_v7  ;;  %v1560_v20 = vadd.f32 %v1559_v12, %v1558_v5  ;;  %v1477_v34 = vmul.f32 %v2117_v9, %v2117_v9 }
 0x11e   : > { %1250 = vst.msk [vmem:[%s2399_s20 + $0x40] sm:$0xf] %vm1233_vm0, %v1982_v6  ;;  %v1983_v21 = vpack.c.bf16 %v725_v15, %v725_v15  ;;  %v1561_v24 = vsel %vm1306_vm1, %v1474_v13, 0.0  ;;  %v1340_v27 = vsel %vm1306_vm1, %v725_v15, 0.0  ;;  %v1475_v28 = vmul.f32 %v725_v15, %v725_v15 }
 0x11f   : > { %1253 = vst.msk [vmem:[%s2399_s20 + $0x4c] sm:$0xf] %vm1233_vm0, %v1985_v14  ;;  %v1562_v29 = vadd.f32 %v1561_v24, %v1560_v20  ;;  %v1341_v30 = vadd.f32 %v1340_v27, %v1339_v18  ;;  %v1565_v42 = vsel %vm1306_vm1, %v1476_v23, 0.0  ;;  %v1344_v44 = vsel %vm1306_vm1, %v2117_v9, 0.0 }
 0x120   : > { %1251 = vst.msk [vmem:[%s2399_s20 + $0x44] sm:$0xf] %vm1233_vm0, %v1983_v21  ;;  %v1563_v35 = vsel %vm1306_vm1, %v1475_v28, 0.0  ;;  %v1567_v60 = vsel %vm1306_vm1, %v1477_v34, 0.0  ;;  %v2016_v15 = vpack.c.bf16 %v2500_v19, %v2500_v19  ;;  %v2014_v28 = vpack.c.bf16 %v2504_v25, %v2504_v25 }
 0x121   : > { %v1343_v36 = vadd.f32 %v1342_v33, %v1341_v30  ;;  %v1564_v38 = vadd.f32 %v1563_v35, %v1562_v29 }
 0x122   : > { %v2120_v39 = vpop.f32.mrb[20].mxu0  ;;  %v2564_v41 = vpop.f32.mrb[20].mxu1  ;;  %1284 = vst.msk [vmem:[%s2399_s20 + $0xc8] sm:$0xf] %vm1233_vm0, %v2016_v15  ;;  %1282 = vst.msk [vmem:[%s2399_s20 + $0xc0] sm:$0xf] %vm1233_vm0, %v2014_v28 }
 0x123   : > { %v1988_v46 = vpack.c.bf16 %v2120_v39, %v2120_v39  ;;  %v738_v47 = vpop.f32.mrb[21].mxu0  ;;  %v2568_v48 = vpop.f32.mrb[21].mxu1  ;;  %v1566_v51 = vadd.f32 %v1565_v42, %v1564_v38  ;;  %v1345_v54 = vadd.f32 %v1344_v44, %v1343_v36  ;;  %v1480_v7 = vmul.f32 %v2120_v39, %v2120_v39 }
 0x124   : > { %v1986_v52 = vpack.c.bf16 %v738_v47, %v738_v47  ;;  %v1346_v55 = vsel %vm1306_vm1, %v738_v47, 0.0  ;;  %v2121_v56 = vpop.f32.mrb[22].mxu0  ;;  %v2573_v59 = vpop.f32.mrb[22].mxu1  ;;  %v1478_v61 = vmul.f32 %v738_v47, %v738_v47  ;;  %v1350_v18 = vsel %vm1306_vm1, %v2120_v39, 0.0 }
 0x125   : > { %1256 = vst.msk [vmem:[%s2399_s20 + $0x58] sm:$0xf] %vm1233_vm0, %v1988_v46  ;;  %v1989_v0 = vpack.c.bf16 %v2121_v56, %v2121_v56  ;;  %v741_v1 = vpop.f32.mrb[23].mxu0  ;;  %v2578_v2 = vpop.f32.mrb[23].mxu1  ;;  %v1347_v3 = vadd.f32 %v1346_v55, %v1345_v54  ;;  %v1568_v5 = vadd.f32 %v1567_v60, %v1566_v51  ;;  %v1481_v20 = vmul.f32 %v2121_v56, %v2121_v56 }
 0x126   : > { %1254 = vst.msk [vmem:[%s2399_s20 + $0x50] sm:$0xf] %vm1233_vm0, %v1986_v52  ;;  %v1987_v6 = vpack.c.bf16 %v741_v1, %v741_v1  ;;  %v1569_v8 = vsel %vm1306_vm1, %v1478_v61, 0.0  ;;  %v1348_v9 = vsel %vm1306_vm1, %v741_v1, 0.0  ;;  %v1479_v12 = vmul.f32 %v741_v1, %v741_v1 }
 0x127   : > { %1257 = vst.msk [vmem:[%s2399_s20 + $0x5c] sm:$0xf] %vm1233_vm0, %v1989_v0  ;;  %v1570_v13 = vadd.f32 %v1569_v8, %v1568_v5  ;;  %v1349_v14 = vadd.f32 %v1348_v9, %v1347_v3  ;;  %v1573_v30 = vsel %vm1306_vm1, %v1480_v7, 0.0  ;;  %v1352_v31 = vsel %vm1306_vm1, %v2121_v56, 0.0 }
 0x128   : > { %1255 = vst.msk [vmem:[%s2399_s20 + $0x54] sm:$0xf] %vm1233_vm0, %v1987_v6  ;;  %v1571_v21 = vsel %vm1306_vm1, %v1479_v12, 0.0  ;;  %v1575_v46 = vsel %vm1306_vm1, %v1481_v20, 0.0  ;;  %v2017_v7 = vpack.c.bf16 %v2509_v32, %v2509_v32 }
 0x129   : > { %v1351_v23 = vadd.f32 %v1350_v18, %v1349_v14  ;;  %v1572_v24 = vadd.f32 %v1571_v21, %v1570_v13  ;;  %v2015_v18 = vpack.c.bf16 %v2514_v37, %v2514_v37 }
 0x12a   : > { %v2124_v27 = vpop.f32.mrb[24].mxu0  ;;  %v2596_v29 = vpop.f32.mrb[24].mxu1  ;;  %1285 = vst.msk [vmem:[%s2399_s20 + $0xcc] sm:$0xf] %vm1233_vm0, %v2017_v7 }
 0x12b   : > { %v1992_v33 = vpack.c.bf16 %v2124_v27, %v2124_v27  ;;  %v754_v34 = vpop.f32.mrb[25].mxu0  ;;  %v2600_v35 = vpop.f32.mrb[25].mxu1  ;;  %v1574_v36 = vadd.f32 %v1573_v30, %v1572_v24  ;;  %v1353_v39 = vadd.f32 %v1352_v31, %v1351_v23  ;;  %v1484_v61 = vmul.f32 %v2124_v27, %v2124_v27  ;;  %1283 = vst.msk [vmem:[%s2399_s20 + $0xc4] sm:$0xf] %vm1233_vm0, %v2015_v18 }
 0x12c   : > { %v1990_v38 = vpack.c.bf16 %v754_v34, %v754_v34  ;;  %v1354_v40 = vsel %vm1306_vm1, %v754_v34, 0.0  ;;  %v2125_v42 = vpop.f32.mrb[26].mxu0  ;;  %v2605_v44 = vpop.f32.mrb[26].mxu1  ;;  %v1482_v47 = vmul.f32 %v754_v34, %v754_v34  ;;  %v1358_v8 = vsel %vm1306_vm1, %v2124_v27, 0.0 }
 0x12d   : > { %1260 = vst.msk [vmem:[%s2399_s20 + $0x68] sm:$0xf] %vm1233_vm0, %v1992_v33  ;;  %v1993_v51 = vpack.c.bf16 %v2125_v42, %v2125_v42  ;;  %v757_v52 = vpop.f32.mrb[27].mxu0  ;;  %v2610_v54 = vpop.f32.mrb[27].mxu1  ;;  %v1355_v55 = vadd.f32 %v1354_v40, %v1353_v39  ;;  %v1576_v56 = vadd.f32 %v1575_v46, %v1574_v36  ;;  %v1485_v9 = vmul.f32 %v2125_v42, %v2125_v42 }
 0x12e   : > { %1258 = vst.msk [vmem:[%s2399_s20 + $0x60] sm:$0xf] %vm1233_vm0, %v1990_v38  ;;  %v1991_v60 = vpack.c.bf16 %v757_v52, %v757_v52  ;;  %v1577_v0 = vsel %vm1306_vm1, %v1482_v47, 0.0  ;;  %v1356_v1 = vsel %vm1306_vm1, %v757_v52, 0.0  ;;  %v1483_v3 = vmul.f32 %v757_v52, %v757_v52 }
 0x12f   : > { %1261 = vst.msk [vmem:[%s2399_s20 + $0x6c] sm:$0xf] %vm1233_vm0, %v1993_v51  ;;  %v1578_v5 = vadd.f32 %v1577_v0, %v1576_v56  ;;  %v1357_v6 = vadd.f32 %v1356_v1, %v1355_v55  ;;  %v1581_v21 = vsel %vm1306_vm1, %v1484_v61, 0.0  ;;  %v1360_v23 = vsel %vm1306_vm1, %v2125_v42, 0.0 }
 0x130   : > { %1259 = vst.msk [vmem:[%s2399_s20 + $0x64] sm:$0xf] %vm1233_vm0, %v1991_v60  ;;  %v1579_v12 = vsel %vm1306_vm1, %v1483_v3, 0.0  ;;  %v1583_v39 = vsel %vm1306_vm1, %v1485_v9, 0.0 }
 0x131   : > { %v1359_v13 = vadd.f32 %v1358_v8, %v1357_v6  ;;  %v1580_v14 = vadd.f32 %v1579_v12, %v1578_v5  ;;  %v2020_v5 = vpack.c.bf16 %v2532_v62, %v2532_v62 }
 0x132   : > { %v2128_v15 = vpop.f32.mrb[28].mxu0  ;;  %v2628_v20 = vpop.f32.mrb[28].mxu1 }
 0x133   : > { %v1996_v24 = vpack.c.bf16 %v2128_v15, %v2128_v15  ;;  %v770_v27 = vpop.f32.mrb[29].mxu0  ;;  %v2632_v28 = vpop.f32.mrb[29].mxu1  ;;  %v1582_v30 = vadd.f32 %v1581_v21, %v1580_v14  ;;  %v1361_v33 = vadd.f32 %v1360_v23, %v1359_v13  ;;  %v1488_v56 = vmul.f32 %v2128_v15, %v2128_v15  ;;  %1288 = vst.msk [vmem:[%s2399_s20 + $0xd8] sm:$0xf] %vm1233_vm0, %v2020_v5 }
 0x134   : > { %v1994_v31 = vpack.c.bf16 %v770_v27, %v770_v27  ;;  %v1362_v34 = vsel %vm1306_vm1, %v770_v27, 0.0  ;;  %v2129_v36 = vpop.f32.mrb[30].mxu0  ;;  %v2637_v38 = vpop.f32.mrb[30].mxu1  ;;  %v1486_v40 = vmul.f32 %v770_v27, %v770_v27  ;;  %v1366_v6 = vsel %vm1306_vm1, %v2128_v15, 0.0 }
 0x135   : > { %1264 = vst.msk [vmem:[%s2399_s20 + $0x78] sm:$0xf] %vm1233_vm0, %v1996_v24  ;;  %v1997_v42 = vpack.c.bf16 %v2129_v36, %v2129_v36  ;;  %v773_v46 = vpop.f32.mrb[31].mxu0  ;;  %v2642_v47 = vpop.f32.mrb[31].mxu1  ;;  %v1363_v51 = vadd.f32 %v1362_v34, %v1361_v33  ;;  %v1584_v52 = vadd.f32 %v1583_v39, %v1582_v30  ;;  %v1489_v7 = vmul.f32 %v2129_v36, %v2129_v36 }
 0x136   : > { %1262 = vst.msk [vmem:[%s2399_s20 + $0x70] sm:$0xf] %vm1233_vm0, %v1994_v31  ;;  %v1995_v55 = vpack.c.bf16 %v773_v46, %v773_v46  ;;  %v1585_v60 = vsel %vm1306_vm1, %v1486_v40, 0.0  ;;  %v1364_v61 = vsel %vm1306_vm1, %v773_v46, 0.0  ;;  %v1487_v0 = vmul.f32 %v773_v46, %v773_v46 }
 0x137   : > { %1265 = vst.msk [vmem:[%s2399_s20 + $0x7c] sm:$0xf] %vm1233_vm0, %v1997_v42  ;;  %v1586_v1 = vadd.f32 %v1585_v60, %v1584_v52  ;;  %v1365_v3 = vadd.f32 %v1364_v61, %v1363_v51  ;;  %v2018_v14 = vpack.c.bf16 %v2536_v4, %v2536_v4  ;;  %v1589_v21 = vsel %vm1306_vm1, %v1488_v56, 0.0 }
 0x138   : > { %1263 = vst.msk [vmem:[%s2399_s20 + $0x74] sm:$0xf] %vm1233_vm0, %v1995_v55  ;;  %v1587_v8 = vsel %vm1306_vm1, %v1487_v0, 0.0  ;;  %v1368_v23 = vsel %vm1306_vm1, %v2129_v36, 0.0  ;;  %v1591_v42 = vsel %vm1306_vm1, %v1489_v7, 0.0  ;;  %v2021_v7 = vpack.c.bf16 %v2541_v11, %v2541_v11 }
 0x139   : > { %v1367_v9 = vadd.f32 %v1366_v6, %v1365_v3  ;;  %v1588_v12 = vadd.f32 %v1587_v8, %v1586_v1  ;;  %1286 = vst.msk [vmem:[%s2399_s20 + $0xd0] sm:$0xf] %vm1233_vm0, %v2018_v14  ;;  %v1494_v14 = vmul.f32 %v2405_v49, %v2405_v49 }
 0x13a   : > { %v2132_v13 = vpop.f32.mrb[32].mxu0  ;;  %v2660_v18 = vpop.f32.mrb[32].mxu1  ;;  %1289 = vst.msk [vmem:[%s2399_s20 + $0xdc] sm:$0xf] %vm1233_vm0, %v2021_v7 }
 0x13b   : > { %v2000_v15 = vpack.c.bf16 %v2132_v13, %v2132_v13  ;;  %v786_v24 = vpop.f32.mrb[33].mxu0  ;;  %v2664_v27 = vpop.f32.mrb[33].mxu1  ;;  %v1590_v30 = vadd.f32 %v1589_v21, %v1588_v12  ;;  %v1369_v33 = vadd.f32 %v1368_v23, %v1367_v9  ;;  %v1492_v61 = vmul.f32 %v2132_v13, %v2132_v13 }
 0x13c   : > { %v1998_v31 = vpack.c.bf16 %v786_v24, %v786_v24  ;;  %v1370_v34 = vsel %vm1306_vm1, %v786_v24, 0.0  ;;  %v2133_v39 = vpop.f32.mrb[34].mxu0  ;;  %v2669_v40 = vpop.f32.mrb[34].mxu1  ;;  %v1490_v36 = vmul.f32 %v786_v24, %v786_v24  ;;  %v1374_v8 = vsel %vm1306_vm1, %v2132_v13, 0.0 }
 0x13d   : > { %1268 = vst.msk [vmem:[%s2399_s20 + $0x88] sm:$0xf] %vm1233_vm0, %v2000_v15  ;;  %v2001_v46 = vpack.c.bf16 %v2133_v39, %v2133_v39  ;;  %v789_v51 = vpop.f32.mrb[35].mxu0  ;;  %v2674_v52 = vpop.f32.mrb[35].mxu1  ;;  %v1371_v55 = vadd.f32 %v1370_v34, %v1369_v33  ;;  %v1592_v56 = vadd.f32 %v1591_v42, %v1590_v30  ;;  %v1493_v9 = vmul.f32 %v2133_v39, %v2133_v39 }
 0x13e   : > { %1266 = vst.msk [vmem:[%s2399_s20 + $0x80] sm:$0xf] %vm1233_vm0, %v1998_v31  ;;  %v1999_v60 = vpack.c.bf16 %v789_v51, %v789_v51  ;;  %v1593_v0 = vsel %vm1306_vm1, %v1490_v36, 0.0  ;;  %v1372_v1 = vsel %vm1306_vm1, %v789_v51, 0.0  ;;  %v1491_v3 = vmul.f32 %v789_v51, %v789_v51 }
 0x13f   : > { %1269 = vst.msk [vmem:[%s2399_s20 + $0x8c] sm:$0xf] %vm1233_vm0, %v2001_v46  ;;  %v1594_v5 = vadd.f32 %v1593_v0, %v1592_v56  ;;  %v1373_v6 = vadd.f32 %v1372_v1, %v1371_v55  ;;  %v2019_v15 = vpack.c.bf16 %v2546_v17, %v2546_v17  ;;  %v1597_v24 = vsel %vm1306_vm1, %v1492_v61, 0.0 }
 0x140   : > { %1267 = vst.msk [vmem:[%s2399_s20 + $0x84] sm:$0xf] %vm1233_vm0, %v1999_v60  ;;  %v1595_v12 = vsel %vm1306_vm1, %v1491_v3, 0.0  ;;  %v1376_v30 = vsel %vm1306_vm1, %v2133_v39, 0.0  ;;  %v1378_v13 = vsel %vm1306_vm1, %v2405_v49, 0.0  ;;  %v2024_v31 = vpack.c.bf16 %v2564_v41, %v2564_v41 }
 0x141   : > { %v1375_v21 = vadd.f32 %v1374_v8, %v1373_v6  ;;  %v1596_v23 = vadd.f32 %v1595_v12, %v1594_v5  ;;  %1287 = vst.msk [vmem:[%s2399_s20 + $0xd4] sm:$0xf] %vm1233_vm0, %v2019_v15  ;;  %v2022_v42 = vpack.c.bf16 %v2568_v48, %v2568_v48  ;;  %v1599_v36 = vsel %vm1306_vm1, %v1493_v9, 0.0 }
 0x142   : > { %v1601_v46 = vsel %vm1306_vm1, %v1494_v14, 0.0  ;;  %v1495_v39 = vmul.f32 %v2413_v57, %v2413_v57  ;;  %1292 = vst.msk [vmem:[%s2399_s20 + $0xe8] sm:$0xf] %vm1233_vm0, %v2024_v31  ;;  %v2025_v49 = vpack.c.bf16 %v2573_v59, %v2573_v59  ;;  %v1496_v56 = vmul.f32 %v2401_v45, %v2401_v45 }
 0x143   : > { %v1598_v33 = vadd.f32 %v1597_v24, %v1596_v23  ;;  %v1377_v34 = vadd.f32 %v1376_v30, %v1375_v21  ;;  %1290 = vst.msk [vmem:[%s2399_s20 + $0xe0] sm:$0xf] %vm1233_vm0, %v2022_v42  ;;  %v1380_v60 = vsel %vm1306_vm1, %v2413_v57, 0.0  ;;  %v2023_v61 = vpack.c.bf16 %v2578_v2, %v2578_v2 }
 0x144   : > { %1293 = vst.msk [vmem:[%s2399_s20 + $0xec] sm:$0xf] %vm1233_vm0, %v2025_v49  ;;  %v1382_v0 = vsel %vm1306_vm1, %v2401_v45, 0.0  ;;  %v2028_v5 = vpack.c.bf16 %v2596_v29, %v2596_v29  ;;  %v1497_v6 = vmul.f32 %v2407_v53, %v2407_v53  ;;  %v1603_v7 = vsel %vm1306_vm1, %v1495_v39, 0.0 }
 0x145   : > { %v1379_v51 = vadd.f32 %v1378_v13, %v1377_v34  ;;  %v1600_v55 = vadd.f32 %v1599_v36, %v1598_v33  ;;  %v1498_v57 = vmul.f32 %v2441_v16, %v2441_v16  ;;  %1291 = vst.msk [vmem:[%s2399_s20 + $0xe4] sm:$0xf] %vm1233_vm0, %v2023_v61  ;;  %v2026_v8 = vpack.c.bf16 %v2600_v35, %v2600_v35 }
 0x146   : > { %1296 = vst.msk [vmem:[%s2399_s20 + $0xf8] sm:$0xf] %vm1233_vm0, %v2028_v5  ;;  %v1605_v12 = vsel %vm1306_vm1, %v1496_v56, 0.0  ;;  %v1384_v14 = vsel %vm1306_vm1, %v2407_v53, 0.0  ;;  %v1386_v21 = vsel %vm1306_vm1, %v2441_v16, 0.0  ;;  %v2029_v23 = vpack.c.bf16 %v2605_v44, %v2605_v44 }
 0x147   : > { %v1602_v1 = vadd.f32 %v1601_v46, %v1600_v55  ;;  %v1381_v3 = vadd.f32 %v1380_v60, %v1379_v51  ;;  %1294 = vst.msk [vmem:[%s2399_s20 + $0xf0] sm:$0xf] %vm1233_vm0, %v2026_v8  ;;  %v2027_v30 = vpack.c.bf16 %v2610_v54, %v2610_v54  ;;  %v1607_v13 = vsel %vm1306_vm1, %v1497_v6, 0.0 }
 0x148   : > { %v1609_v31 = vsel %vm1306_vm1, %v1498_v57, 0.0  ;;  %v1499_v53 = vmul.f32 %v2450_v26, %v2450_v26  ;;  %1297 = vst.msk [vmem:[%s2399_s20 + $0xfc] sm:$0xf] %vm1233_vm0, %v2029_v23  ;;  %v2032_v16 = vpack.c.bf16 %v2628_v20, %v2628_v20  ;;  %v1500_v42 = vmul.f32 %v2437_v10, %v2437_v10 }
 0x149   : > { %v1383_v45 = vadd.f32 %v1382_v0, %v1381_v3  ;;  %v1604_v9 = vadd.f32 %v1603_v7, %v1602_v1  ;;  %1295 = vst.msk [vmem:[%s2399_s20 + $0xf4] sm:$0xf] %vm1233_vm0, %v2027_v30  ;;  %v1388_v36 = vsel %vm1306_vm1, %v2450_v26, 0.0  ;;  %v2030_v46 = vpack.c.bf16 %v2632_v28, %v2632_v28 }
 0x14a   : > { %1300 = vst.msk [vmem:[%s2399_s20 + $0x108] sm:$0xf] %vm1233_vm0, %v2032_v16  ;;  %v1390_v39 = vsel %vm1306_vm1, %v2437_v10, 0.0  ;;  %v2033_v55 = vpack.c.bf16 %v2637_v38, %v2637_v38  ;;  %v1501_v56 = vmul.f32 %v2446_v22, %v2446_v22  ;;  %v1611_v60 = vsel %vm1306_vm1, %v1499_v53, 0.0 }
 0x14b   : > { %v1606_v15 = vadd.f32 %v1605_v12, %v1604_v9  ;;  %v1385_v24 = vadd.f32 %v1384_v14, %v1383_v45  ;;  %v1502_v26 = vmul.f32 %v2474_v50, %v2474_v50  ;;  %1298 = vst.msk [vmem:[%s2399_s20 + $0x100] sm:$0xf] %vm1233_vm0, %v2030_v46  ;;  %v2031_v61 = vpack.c.bf16 %v2642_v47, %v2642_v47 }
 0x14c   : > { %1301 = vst.msk [vmem:[%s2399_s20 + $0x10c] sm:$0xf] %vm1233_vm0, %v2033_v55  ;;  %v1613_v1 = vsel %vm1306_vm1, %v1500_v42, 0.0  ;;  %v1392_v3 = vsel %vm1306_vm1, %v2446_v22, 0.0  ;;  %v1394_v5 = vsel %vm1306_vm1, %v2474_v50, 0.0  ;;  %v2036_v6 = vpack.c.bf16 %v2660_v18, %v2660_v18 }
 0x14d   : > { %v1387_v33 = vadd.f32 %v1386_v21, %v1385_v24  ;;  %v1608_v34 = vadd.f32 %v1607_v13, %v1606_v15  ;;  %1299 = vst.msk [vmem:[%s2399_s20 + $0x104] sm:$0xf] %vm1233_vm0, %v2031_v61  ;;  %v2034_v8 = vpack.c.bf16 %v2664_v27, %v2664_v27  ;;  %v1615_v45 = vsel %vm1306_vm1, %v1501_v56, 0.0 }
 0x14e   : > { %v1617_v9 = vsel %vm1306_vm1, %v1502_v26, 0.0  ;;  %v1503_v22 = vmul.f32 %v2482_v63, %v2482_v63  ;;  %1304 = vst.msk [vmem:[%s2399_s20 + $0x118] sm:$0xf] %vm1233_vm0, %v2036_v6  ;;  %v2037_v50 = vpack.c.bf16 %v2669_v40, %v2669_v40  ;;  %v1504_v21 = vmul.f32 %v2468_v43, %v2468_v43 }
 0x14f   : > { %v1610_v49 = vadd.f32 %v1609_v31, %v1608_v34  ;;  %v1389_v51 = vadd.f32 %v1388_v36, %v1387_v33  ;;  %1302 = vst.msk [vmem:[%s2399_s20 + $0x110] sm:$0xf] %vm1233_vm0, %v2034_v8  ;;  %v1396_v23 = vsel %vm1306_vm1, %v2482_v63, 0.0  ;;  %v2035_v15 = vpack.c.bf16 %v2674_v52, %v2674_v52 }
 0x150   : > { %1305 = vst.msk [vmem:[%s2399_s20 + $0x11c] sm:$0xf] %vm1233_vm0, %v2037_v50  ;;  %v1398_v13 = vsel %vm1306_vm1, %v2468_v43, 0.0  ;;  %v1505_v31 = vmul.f32 %v2477_v58, %v2477_v58  ;;  %v1619_v53 = vsel %vm1306_vm1, %v1503_v22, 0.0  ;;  %v1506_v16 = vmul.f32 %v2504_v25, %v2504_v25 }
 0x151   : > { %v1391_v10 = vadd.f32 %v1390_v39, %v1389_v51  ;;  %v1612_v0 = vadd.f32 %v1611_v60, %v1610_v49  ;;  %1303 = vst.msk [vmem:[%s2399_s20 + $0x114] sm:$0xf] %vm1233_vm0, %v2035_v15  ;;  %v1621_v34 = vsel %vm1306_vm1, %v1504_v21, 0.0  ;;  %v1400_v42 = vsel %vm1306_vm1, %v2477_v58, 0.0 }
 0x152   : > { %v1402_v43 = vsel %vm1306_vm1, %v2504_v25, 0.0  ;;  %v1623_v39 = vsel %vm1306_vm1, %v1505_v31, 0.0  ;;  %v1625_v49 = vsel %vm1306_vm1, %v1506_v16, 0.0  ;;  %v1507_v51 = vmul.f32 %v2514_v37, %v2514_v37 }
 0x153   : > { %v1614_v7 = vadd.f32 %v1613_v1, %v1612_v0  ;;  %v1393_v57 = vadd.f32 %v1392_v3, %v1391_v10  ;;  %v1508_v60 = vmul.f32 %v2500_v19, %v2500_v19  ;;  %v1404_v58 = vsel %vm1306_vm1, %v2514_v37, 0.0 }
 0x154   : > { %v1406_v25 = vsel %vm1306_vm1, %v2500_v19, 0.0  ;;  %v1509_v10 = vmul.f32 %v2509_v32, %v2509_v32  ;;  %v1627_v0 = vsel %vm1306_vm1, %v1507_v51, 0.0  ;;  %v1510_v1 = vmul.f32 %v2536_v4, %v2536_v4 }
 0x155   : > { %v1395_v12 = vadd.f32 %v1394_v5, %v1393_v57  ;;  %v1616_v14 = vadd.f32 %v1615_v45, %v1614_v7  ;;  %v1629_v6 = vsel %vm1306_vm1, %v1508_v60, 0.0  ;;  %v1408_v37 = vsel %vm1306_vm1, %v2509_v32, 0.0 }
 0x156   : > { %v1410_v7 = vsel %vm1306_vm1, %v2536_v4, 0.0  ;;  %v1631_v8 = vsel %vm1306_vm1, %v1509_v10, 0.0  ;;  %v1633_v45 = vsel %vm1306_vm1, %v1510_v1, 0.0  ;;  %v1412_v32 = vsel %vm1306_vm1, %v2546_v17, 0.0 }
 0x157   : > { %v1618_v24 = vadd.f32 %v1617_v9, %v1616_v14  ;;  %v1397_v30 = vadd.f32 %v1396_v23, %v1395_v12  ;;  %v1511_v9 = vmul.f32 %v2546_v17, %v2546_v17  ;;  %v1512_v12 = vmul.f32 %v2532_v62, %v2532_v62 }
 0x158   : > { %v1414_v4 = vsel %vm1306_vm1, %v2532_v62, 0.0  ;;  %v1513_v23 = vmul.f32 %v2541_v11, %v2541_v11  ;;  %v1416_v17 = vsel %vm1306_vm1, %v2541_v11, 0.0  ;;  %v1420_v11 = vsel %vm1306_vm1, %v2578_v2, 0.0 }
 0x159   : > { %v1399_v63 = vadd.f32 %v1398_v13, %v1397_v30  ;;  %v1620_v33 = vadd.f32 %v1619_v53, %v1618_v24  ;;  %v1635_v15 = vsel %vm1306_vm1, %v1511_v9, 0.0  ;;  %v1514_v24 = vmul.f32 %v2568_v48, %v2568_v48 }
 0x15a   : > { %v1637_v31 = vsel %vm1306_vm1, %v1512_v12, 0.0  ;;  %v1418_v53 = vsel %vm1306_vm1, %v2568_v48, 0.0  ;;  %v1422_v48 = vsel %vm1306_vm1, %v2564_v41, 0.0 }
 0x15b   : > { %v1622_v36 = vadd.f32 %v1621_v34, %v1620_v33  ;;  %v1401_v46 = vadd.f32 %v1400_v42, %v1399_v63  ;;  %v1639_v63 = vsel %vm1306_vm1, %v1513_v23, 0.0  ;;  %v1641_v33 = vsel %vm1306_vm1, %v1514_v24, 0.0 }
 0x15c   : > { %v1515_v34 = vmul.f32 %v2578_v2, %v2578_v2  ;;  %v1424_v2 = vsel %vm1306_vm1, %v2573_v59, 0.0  ;;  %v1524_v23 = vmul.f32 %v2628_v20, %v2628_v20 }
 0x15d   : > { %v1403_v55 = vadd.f32 %v1402_v43, %v1401_v46  ;;  %v1624_v56 = vadd.f32 %v1623_v39, %v1622_v36  ;;  %v1516_v36 = vmul.f32 %v2564_v41, %v2564_v41 }
 0x15e   : > { %v1643_v51 = vsel %vm1306_vm1, %v1515_v34, 0.0 }
 0x15f   : > { %v1626_v26 = vadd.f32 %v1625_v49, %v1624_v56  ;;  %v1405_v61 = vadd.f32 %v1404_v58, %v1403_v55  ;;  %v1517_v49 = vmul.f32 %v2573_v59, %v2573_v59  ;;  %v1518_v55 = vmul.f32 %v2600_v35, %v2600_v35 }
 0x160   : > { %v1645_v58 = vsel %vm1306_vm1, %v1516_v36, 0.0  ;;  %v1428_v59 = vsel %vm1306_vm1, %v2610_v54, 0.0 }
 0x161   : > { %v1407_v3 = vadd.f32 %v1406_v25, %v1405_v61  ;;  %v1628_v5 = vadd.f32 %v1627_v0, %v1626_v26  ;;  %v1426_v26 = vsel %vm1306_vm1, %v2600_v35, 0.0  ;;  %v1647_v25 = vsel %vm1306_vm1, %v1517_v49, 0.0 }
 0x162   : > { %v1649_v10 = vsel %vm1306_vm1, %v1518_v55, 0.0  ;;  %v1519_v0 = vmul.f32 %v2610_v54, %v2610_v54  ;;  %v1430_v35 = vsel %vm1306_vm1, %v2596_v29, 0.0  ;;  %v1432_v54 = vsel %vm1306_vm1, %v2605_v44, 0.0 }
 0x163   : > { %v1630_v57 = vadd.f32 %v1629_v6, %v1628_v5  ;;  %v1409_v19 = vadd.f32 %v1408_v37, %v1407_v3  ;;  %v1520_v5 = vmul.f32 %v2596_v29, %v2596_v29 }
 0x165   : > { %v1411_v22 = vadd.f32 %v1410_v7, %v1409_v19  ;;  %v1632_v50 = vadd.f32 %v1631_v8, %v1630_v57  ;;  %v1521_v7 = vmul.f32 %v2605_v44, %v2605_v44  ;;  %v1651_v57 = vsel %vm1306_vm1, %v1519_v0, 0.0 }
 0x166   : > { %v1522_v19 = vmul.f32 %v2632_v28, %v2632_v28  ;;  %v1653_v9 = vsel %vm1306_vm1, %v1520_v5, 0.0  ;;  %v1436_v44 = vsel %vm1306_vm1, %v2642_v47, 0.0 }
 0x167   : > { %v1634_v14 = vadd.f32 %v1633_v45, %v1632_v50  ;;  %v1413_v21 = vadd.f32 %v1412_v32, %v1411_v22  ;;  %v1434_v22 = vsel %vm1306_vm1, %v2632_v28, 0.0  ;;  %v1655_v12 = vsel %vm1306_vm1, %v1521_v7, 0.0 }
 0x168   : > { %v1657_v32 = vsel %vm1306_vm1, %v1522_v19, 0.0  ;;  %v1438_v28 = vsel %vm1306_vm1, %v2628_v20, 0.0 }
 0x169   : > { %v1415_v30 = vadd.f32 %v1414_v4, %v1413_v21  ;;  %v1636_v13 = vadd.f32 %v1635_v15, %v1634_v14  ;;  %v1523_v14 = vmul.f32 %v2642_v47, %v2642_v47  ;;  %v1440_v47 = vsel %vm1306_vm1, %v2637_v38, 0.0 }
 0x16b   : > { %v1638_v16 = vadd.f32 %v1637_v31, %v1636_v13  ;;  %v1417_v62 = vadd.f32 %v1416_v17, %v1415_v30  ;;  %v1525_v30 = vmul.f32 %v2637_v38, %v2637_v38  ;;  %v1659_v13 = vsel %vm1306_vm1, %v1523_v14, 0.0 }
 0x16c   : > { %v1526_v31 = vmul.f32 %v2664_v27, %v2664_v27  ;;  %v1444_v38 = vsel %vm1306_vm1, %v2674_v52, 0.0 }
 0x16d   : > { %v1419_v42 = vadd.f32 %v1418_v53, %v1417_v62  ;;  %v1640_v43 = vadd.f32 %v1639_v63, %v1638_v16  ;;  %v1661_v16 = vsel %vm1306_vm1, %v1524_v23, 0.0  ;;  %v1442_v62 = vsel %vm1306_vm1, %v2664_v27, 0.0 }
 0x16e   : > { %v1665_v34 = vsel %vm1306_vm1, %v1526_v31, 0.0 }
 0x16f   : > { %v1642_v46 = vadd.f32 %v1641_v33, %v1640_v43  ;;  %v1421_v39 = vadd.f32 %v1420_v11, %v1419_v42  ;;  %v1663_v33 = vsel %vm1306_vm1, %v1525_v30, 0.0  ;;  %v1527_v42 = vmul.f32 %v2674_v52, %v2674_v52 }
 0x170   : > { %v1528_v11 = vmul.f32 %v2660_v18, %v2660_v18 }
 0x171   : > { %v1423_v56 = vadd.f32 %v1422_v48, %v1421_v39  ;;  %v1644_v60 = vadd.f32 %v1643_v51, %v1642_v46  ;;  %v1446_v39 = vsel %vm1306_vm1, %v2660_v18, 0.0  ;;  %v1529_v48 = vmul.f32 %v2669_v40, %v2669_v40 }
 0x172   : > { %v1667_v49 = vsel %vm1306_vm1, %v1527_v42, 0.0 }
 0x173   : > { %v1646_v61 = vadd.f32 %v1645_v58, %v1644_v60  ;;  %v1425_v41 = vadd.f32 %v1424_v2, %v1423_v56  ;;  %v1669_v56 = vsel %vm1306_vm1, %v1528_v11, 0.0  ;;  %v1448_v60 = vsel %vm1306_vm1, %v2669_v40, 0.0 }
 0x174   : > { %v1671_v2 = vsel %vm1306_vm1, %v1529_v48, 0.0 }
 0x175   : > { %v1427_v1 = vadd.f32 %v1426_v26, %v1425_v41  ;;  %v1648_v3 = vadd.f32 %v1647_v25, %v1646_v61 }
 0x177   : > { %v1650_v6 = vadd.f32 %v1649_v10, %v1648_v3  ;;  %v1429_v37 = vadd.f32 %v1428_v59, %v1427_v1 }
 0x179   : > { %v1431_v8 = vadd.f32 %v1430_v35, %v1429_v37  ;;  %v1652_v45 = vadd.f32 %v1651_v57, %v1650_v6 }
 0x17b   : > { %v1654_v50 = vadd.f32 %v1653_v9, %v1652_v45  ;;  %v1433_v29 = vadd.f32 %v1432_v54, %v1431_v8 }
 0x17d   : > { %v1435_v21 = vadd.f32 %v1434_v22, %v1433_v29  ;;  %v1656_v4 = vadd.f32 %v1655_v12, %v1654_v50 }
 0x17f   : > { %v1658_v15 = vadd.f32 %v1657_v32, %v1656_v4  ;;  %v1437_v24 = vadd.f32 %v1436_v44, %v1435_v21 }
 0x181   : > { %v1439_v17 = vadd.f32 %v1438_v28, %v1437_v24  ;;  %v1660_v53 = vadd.f32 %v1659_v13, %v1658_v15 }
 0x183   : > { %v1662_v63 = vadd.f32 %v1661_v16, %v1660_v53  ;;  %v1441_v20 = vadd.f32 %v1440_v47, %v1439_v17 }
 0x185   : > { %v1443_v43 = vadd.f32 %v1442_v62, %v1441_v20  ;;  %v1664_v36 = vadd.f32 %v1663_v33, %v1662_v63 }
 0x187   : > { %v1666_v46 = vadd.f32 %v1665_v34, %v1664_v36  ;;  %v1445_v27 = vadd.f32 %v1444_v38, %v1443_v43 }
 0x189   : > { %v1447_v51 = vadd.f32 %v1446_v39, %v1445_v27  ;;  %v1668_v55 = vadd.f32 %v1667_v49, %v1666_v46 }
 0x18b   : > { %v1449_v58 = vadd.f32 %v1448_v60, %v1447_v51  ;;  %v1670_v52 = vadd.f32 %v1669_v56, %v1668_v55 }
 0x18d   : > { %v1450_v26 = vrot.slane %v1449_v58, 4  ;;  %v1672_v61 = vadd.f32 %v1671_v2, %v1670_v52 }
 0x18f   : > { %v1451_v18 = vadd.f32 %v1450_v26, %v1449_v58  ;;  %v1673_v41 = vrot.slane %v1672_v61, 4 }
 0x191   : > { %v1452_v25 = vrot.slane %v1451_v18, 2  ;;  %v1674_v10 = vadd.f32 %v1673_v41, %v1672_v61 }
 0x193   : > { %v1453_v0 = vadd.f32 %v1452_v25, %v1451_v18  ;;  %v1675_v1 = vrot.slane %v1674_v10, 2 }
 0x195   : > { %v1454_v3 = vrot.slane %v1453_v0, 1  ;;  %v1676_v5 = vadd.f32 %v1675_v1, %v1674_v10 }
 0x197   : > { %v1455_v40 = vadd.f32 %v1454_v3, %v1453_v0  ;;  %v1677_v59 = vrot.slane %v1676_v5, 1 }
 0x199   : > { %1457 = vst.msk [vmem:[%s264_s23] sm:$0x1] %vm1456_vm2, %v1455_v40  ;;  %v1678_v6 = vadd.f32 %v1677_v59, %v1676_v5 }
 0x19b   : > { %1679 = vst.msk [vmem:[%s270_s26] sm:$0x1] %vm1456_vm2, %v1678_v6 }
 0x19c PF: > { %s15_s17 = sadd.s32 1, %s2276_s17   ;;  %s2963_s15 = smov %s2272_s16 }
 0x19d   : > { %p12_p6 = scmp.ge.s32.totalorder %s15_s17, 4   ;;  %s2964_s16 = smov %s2966_s18 }
 0x19f   :  { %14 = sbr.rel (!%p12_p6) target bundleno = 2 (0x2), region = 85 }

// kernel: _lambda_.3
= control target key start
LH: loop header
LB: loop body
LE: loop exit
PB: predicated region body
PF: predicated region fallthrough
CT: control target
= control target key end

     0   :  { %s2526_s15 = smov 0   ;;  %s2528_s16 = smov 0   ;;  %s3270_s0 = inlined_call_operand.vmem [shape: bf16[1152,256], index: 0, kind: input, shape index: {}]   ;;  %s3271_s1 = inlined_call_operand.vmem [shape: bf16[256,16], index: 1, kind: input, shape index: {}]   ;;  %s3272_s2 = inlined_call_operand.vmem [shape: bf16[1152,16], index: 2, kind: output, shape index: {0}]   ;;  %s3273_s3 = inlined_call_operand.vmem [shape: f32[2,1,16], index: 3, kind: output, shape index: {1}]   ;;  %s3274_s4 = inlined_call_operand.vmem [shape: f32[2,1,16], index: 4, kind: output, shape index: {2}]  }
   0x1   :  { %s2530_s17 = smov 0  }
   0x2 LB: > { %s27_s18 = sadd.s32 1, %s2494_s16  ;;  %p2056_p0 = scmp.ge.s32.totalorder %s2498_s17, 1  ;;  %s2498_s17 = sphi %s2530_s17, %s15_s17   ;;  %s2494_s16 = sphi %s2528_s16, %s3276_s16   ;;  %s2490_s15 = sphi %s2526_s15, %s3275_s15  }
   0x3   : > { %p29_p1 = scmp.ge.s32.totalorder %s27_s18, 2  ;;  %p196_p2 = scmp.lt.s32.totalorder %s2498_s17, 3 }
   0x5   : > { %s3278_s18 = smov (%p29_p1, %s27_s18), 0  ;;  %p197_p3 = pnand %p2056_p0, %p196_p2 }
   0x6   : > { %v2352_v0 = vld [vmem:[%s3271_s1] sm:$0xff] (!%p197_p3)   ;;  %v2500_v1 = vmov (!%p197_p3), 0   ;;  %s242_s21 = smul.u32 (!%p197_p3), 72, %s2490_s15  ;;  %v2353_v2 = vld [vmem:[%s3271_s1 + $0x8] sm:$0xff] (!%p197_p3)   ;;  %v2354_v3 = vld [vmem:[%s3271_s1 + $0x10] sm:$0xff] (!%p197_p3)   ;;  %vm1444_vm0 = vcmask (!%p197_p3), 125952  }
   0x7   : > { %200 = sbr.rel (%p197_p3) target bundleno = 511 (0x1ff), region = 28  ;;  %835 = vmatprep.subr.bf16.mxu0 (!%p197_p3), %v2500_v1  ;;  %2295 = vmatprep.subr.bf16.mxu1 (!%p197_p3), %v2500_v1  ;;  %v2355_v4 = vld [vmem:[%s3271_s1 + $0x18] sm:$0xff] (!%p197_p3)   ;;  %v2356_v5 = vld [vmem:[%s3271_s1 + $0x20] sm:$0xff] (!%p197_p3)   ;;  %v2357_v7 = vld [vmem:[%s3271_s1 + $0x28] sm:$0xff] (!%p197_p3)   ;;  %vm1517_vm1 = vcmask (!%p197_p3), 130048   ;;  %p262_p5 = scmp.lt.s32.totalorder (!%p197_p3), %s2490_s15, 1 }
   0x8   : > { %836 = vmatpush1.bf16.msra.mxu0 (!%p197_p3), %v2352_v0  ;;  %2311 = vmatpush1.bf16.msra.mxu1 (!%p197_p3), %v2352_v0  ;;  %p243_p4 = scmp.lt.s32.totalorder (!%p197_p3), %s242_s21, 143  ;;  %v2358_v8 = vld [vmem:[%s3271_s1 + $0x30] sm:$0xff] (!%p197_p3)   ;;  %v2359_v9 = vld [vmem:[%s3271_s1 + $0x38] sm:$0xff] (!%p197_p3)   ;;  %v2360_v11 = vld [vmem:[%s3271_s1 + $0x40] sm:$0xff] (!%p197_p3)   ;;  %vm1667_vm2 = vcmask (!%p197_p3), 122880  }
   0x9   : > { %837 = vmatprep.subr.bf16.mxu0 (!%p197_p3), %v2500_v1  ;;  %2296 = vmatprep.subr.bf16.mxu1 (!%p197_p3), %v2500_v1  ;;  %v2361_v12 = vld [vmem:[%s3271_s1 + $0x48] sm:$0xff] (!%p197_p3)   ;;  %v2362_v13 = vld [vmem:[%s3271_s1 + $0x50] sm:$0xff] (!%p197_p3)   ;;  %v2363_v14 = vld [vmem:[%s3271_s1 + $0x58] sm:$0xff] (!%p197_p3)  }
   0xa   : > { %v2364_v15 = vld [vmem:[%s3271_s1 + $0x60] sm:$0xff] (!%p197_p3)   ;;  %v2365_v16 = vld [vmem:[%s3271_s1 + $0x68] sm:$0xff] (!%p197_p3)   ;;  %v2366_v17 = vld [vmem:[%s3271_s1 + $0x70] sm:$0xff] (!%p197_p3)  }
   0xb   : > { %v2367_v18 = vld [vmem:[%s3271_s1 + $0x78] sm:$0xff] (!%p197_p3)  }
   0xc   : > { %838 = vmatpush1.bf16.msra.mxu0 (!%p197_p3), %v2353_v2  ;;  %2312 = vmatpush1.bf16.msra.mxu1 (!%p197_p3), %v2353_v2 }
   0xd   : > { %839 = vmatprep.subr.bf16.mxu0 (!%p197_p3), %v2500_v1  ;;  %2297 = vmatprep.subr.bf16.mxu1 (!%p197_p3), %v2500_v1 }
   0xe   : > { %s3280_s21 = smov (!%p243_p4, %s242_s21), 143  ;;  %s3282_s15 = smov (!%p262_p5, %s2490_s15), 1 }
   0xf   : > { %s2222_s28 = sshll.u32 %s3280_s21, 3  ;;  %s2059_s10 = sshll.u32 %s3280_s21, 2 }
  0x10   : > { %840 = vmatpush1.bf16.msra.mxu0 %v2354_v3  ;;  %2313 = vmatpush1.bf16.msra.mxu1 %v2354_v3  ;;  %s2576_s7 = scalar_lea.vmem %s3270_s0, %s2222_s28  ;;  %s2711_s13 = scalar_lea.vmem %s3272_s2, %s2059_s10 }
  0x11   : > { %841 = vmatprep.subr.bf16.mxu0 %v2500_v1  ;;  %2298 = vmatprep.subr.bf16.mxu1 %v2500_v1  ;;  %v2370_v6 = vld [vmem:[%s2576_s7 + $0x4] ss:$8 sps:$4 sm:$0xff]   ;;  %v2368_v19 = vld [vmem:[%s2576_s7] ss:$8 sps:$4 sm:$0xff]   ;;  %v2371_v21 = vld [vmem:[%s2576_s7 + $0x14] ss:$8 sps:$4 sm:$0xff]   ;;  %s267_s14 = scalar_lea.vmem %s3273_s3, %s3282_s15  ;;  %s273_s22 = scalar_lea.vmem %s3274_s4, %s3282_s15 }
  0x12   : > { %867 = vmatprep.mubr.bf16.mxu0 %v2370_v6  ;;  %v2397_v10 = vld [vmem:[%s2576_s7 + $0x124] ss:$8 sps:$4 sm:$0xff]   ;;  %v2395_v20 = vld [vmem:[%s2576_s7 + $0x120] ss:$8 sps:$4 sm:$0xff]   ;;  %v2401_v22 = vld [vmem:[%s2576_s7 + $0x134] ss:$8 sps:$4 sm:$0xff]  }
  0x13   : > { %1011 = vmatprep.mubr.bf16.mxu1 %v2397_v10  ;;  %v2373_v23 = vld [vmem:[%s2576_s7 + $0x10] ss:$8 sps:$4 sm:$0xff]   ;;  %v2374_v25 = vld [vmem:[%s2576_s7 + $0x24] ss:$8 sps:$4 sm:$0xff]   ;;  %v2376_v27 = vld [vmem:[%s2576_s7 + $0x20] ss:$8 sps:$4 sm:$0xff]  }
  0x14   : > { %842 = vmatpush1.bf16.msra.mxu0 %v2355_v4  ;;  %2314 = vmatpush1.bf16.msra.mxu1 %v2355_v4  ;;  %v2403_v24 = vld [vmem:[%s2576_s7 + $0x130] ss:$8 sps:$4 sm:$0xff]   ;;  %v2407_v26 = vld [vmem:[%s2576_s7 + $0x144] ss:$8 sps:$4 sm:$0xff]   ;;  %v2409_v28 = vld [vmem:[%s2576_s7 + $0x140] ss:$8 sps:$4 sm:$0xff]  }
  0x15   : > { %843 = vmatprep.subr.bf16.mxu0 %v2500_v1  ;;  %2299 = vmatprep.subr.bf16.mxu1 %v2500_v1  ;;  %v2377_v29 = vld [vmem:[%s2576_s7 + $0x34] ss:$8 sps:$4 sm:$0xff]   ;;  %v2379_v31 = vld [vmem:[%s2576_s7 + $0x30] ss:$8 sps:$4 sm:$0xff]   ;;  %v2380_v33 = vld [vmem:[%s2576_s7 + $0x44] ss:$8 sps:$4 sm:$0xff]  }
  0x16   : > { %v2413_v30 = vld [vmem:[%s2576_s7 + $0x154] ss:$8 sps:$4 sm:$0xff]   ;;  %v2415_v32 = vld [vmem:[%s2576_s7 + $0x150] ss:$8 sps:$4 sm:$0xff]   ;;  %v2419_v34 = vld [vmem:[%s2576_s7 + $0x164] ss:$8 sps:$4 sm:$0xff]  }
  0x17   : > { %v2382_v35 = vld [vmem:[%s2576_s7 + $0x40] ss:$8 sps:$4 sm:$0xff]   ;;  %v2383_v37 = vld [vmem:[%s2576_s7 + $0x54] ss:$8 sps:$4 sm:$0xff]   ;;  %v2385_v39 = vld [vmem:[%s2576_s7 + $0x50] ss:$8 sps:$4 sm:$0xff]  }
  0x18   : > { %844 = vmatpush1.bf16.msra.mxu0 %v2356_v5  ;;  %2315 = vmatpush1.bf16.msra.mxu1 %v2356_v5  ;;  %v2421_v36 = vld [vmem:[%s2576_s7 + $0x160] ss:$8 sps:$4 sm:$0xff]   ;;  %v2425_v38 = vld [vmem:[%s2576_s7 + $0x174] ss:$8 sps:$4 sm:$0xff]   ;;  %v2427_v40 = vld [vmem:[%s2576_s7 + $0x170] ss:$8 sps:$4 sm:$0xff]  }
  0x19   : > { %845 = vmatprep.subr.bf16.mxu0 %v2500_v1  ;;  %2300 = vmatprep.subr.bf16.mxu1 %v2500_v1  ;;  %v2386_v41 = vld [vmem:[%s2576_s7 + $0x64] ss:$8 sps:$4 sm:$0xff]   ;;  %v2388_v43 = vld [vmem:[%s2576_s7 + $0x60] ss:$8 sps:$4 sm:$0xff]   ;;  %v2389_v45 = vld [vmem:[%s2576_s7 + $0x74] ss:$8 sps:$4 sm:$0xff]  }
  0x1a   : > { %v2431_v42 = vld [vmem:[%s2576_s7 + $0x184] ss:$8 sps:$4 sm:$0xff]   ;;  %v2433_v44 = vld [vmem:[%s2576_s7 + $0x180] ss:$8 sps:$4 sm:$0xff]   ;;  %v2437_v46 = vld [vmem:[%s2576_s7 + $0x194] ss:$8 sps:$4 sm:$0xff]  }
  0x1b   : > { %v2391_v47 = vld [vmem:[%s2576_s7 + $0x70] ss:$8 sps:$4 sm:$0xff]   ;;  %v2392_v49 = vld [vmem:[%s2576_s7 + $0x84] ss:$8 sps:$4 sm:$0xff]   ;;  %v2394_v51 = vld [vmem:[%s2576_s7 + $0x80] ss:$8 sps:$4 sm:$0xff]  }
  0x1c   : > { %846 = vmatpush1.bf16.msra.mxu0 %v2357_v7  ;;  %2316 = vmatpush1.bf16.msra.mxu1 %v2357_v7  ;;  %v2439_v48 = vld [vmem:[%s2576_s7 + $0x190] ss:$8 sps:$4 sm:$0xff]   ;;  %v2443_v50 = vld [vmem:[%s2576_s7 + $0x1a4] ss:$8 sps:$4 sm:$0xff]   ;;  %v2445_v52 = vld [vmem:[%s2576_s7 + $0x1a0] ss:$8 sps:$4 sm:$0xff]  }
  0x1d   : > { %847 = vmatprep.subr.bf16.mxu0 %v2500_v1  ;;  %2301 = vmatprep.subr.bf16.mxu1 %v2500_v1  ;;  %v2398_v53 = vld [vmem:[%s2576_s7 + $0x94] ss:$8 sps:$4 sm:$0xff]   ;;  %v2400_v55 = vld [vmem:[%s2576_s7 + $0x90] ss:$8 sps:$4 sm:$0xff]   ;;  %v2404_v57 = vld [vmem:[%s2576_s7 + $0xa4] ss:$8 sps:$4 sm:$0xff]  }
  0x1e   : > { %v2449_v54 = vld [vmem:[%s2576_s7 + $0x1b4] ss:$8 sps:$4 sm:$0xff]   ;;  %v2451_v56 = vld [vmem:[%s2576_s7 + $0x1b0] ss:$8 sps:$4 sm:$0xff]   ;;  %v2452_v58 = vld [vmem:[%s2576_s7 + $0x1c4] ss:$8 sps:$4 sm:$0xff]  }
  0x1f   : > { %v2406_v59 = vld [vmem:[%s2576_s7 + $0xa0] ss:$8 sps:$4 sm:$0xff]   ;;  %v2410_v61 = vld [vmem:[%s2576_s7 + $0xb4] ss:$8 sps:$4 sm:$0xff]   ;;  %v2412_v63 = vld [vmem:[%s2576_s7 + $0xb0] ss:$8 sps:$4 sm:$0xff]  }
  0x20   : > { %848 = vmatpush1.bf16.msra.mxu0 %v2358_v8  ;;  %2317 = vmatpush1.bf16.msra.mxu1 %v2358_v8  ;;  %v2454_v60 = vld [vmem:[%s2576_s7 + $0x1c0] ss:$8 sps:$4 sm:$0xff]   ;;  %v2455_v62 = vld [vmem:[%s2576_s7 + $0x1d4] ss:$8 sps:$4 sm:$0xff]   ;;  %v2457_v0 = vld [vmem:[%s2576_s7 + $0x1d0] ss:$8 sps:$4 sm:$0xff]  }
  0x21   : > { %849 = vmatprep.subr.bf16.mxu0 %v2500_v1  ;;  %2302 = vmatprep.subr.bf16.mxu1 %v2500_v1  ;;  %v2458_v2 = vld [vmem:[%s2576_s7 + $0x1e4] ss:$8 sps:$4 sm:$0xff]   ;;  %v2418_v3 = vld [vmem:[%s2576_s7 + $0xc0] ss:$8 sps:$4 sm:$0xff]   ;;  %v2422_v5 = vld [vmem:[%s2576_s7 + $0xd4] ss:$8 sps:$4 sm:$0xff]  }
  0x22   : > { %v2460_v4 = vld [vmem:[%s2576_s7 + $0x1e0] ss:$8 sps:$4 sm:$0xff]   ;;  %v2461_v6 = vld [vmem:[%s2576_s7 + $0x1f4] ss:$8 sps:$4 sm:$0xff]   ;;  %v2424_v7 = vld [vmem:[%s2576_s7 + $0xd0] ss:$8 sps:$4 sm:$0xff]  }
  0x23   : > { %v2463_v8 = vld [vmem:[%s2576_s7 + $0x1f0] ss:$8 sps:$4 sm:$0xff]   ;;  %v2464_v10 = vld [vmem:[%s2576_s7 + $0x204] ss:$8 sps:$4 sm:$0xff]  }
  0x24   : > { %850 = vmatpush1.bf16.msra.mxu0 %v2359_v9  ;;  %2318 = vmatpush1.bf16.msra.mxu1 %v2359_v9  ;;  %v2428_v9 = vld [vmem:[%s2576_s7 + $0xe4] ss:$8 sps:$4 sm:$0xff]  }
  0x25   : > { %851 = vmatprep.subr.bf16.mxu0 %v2500_v1  ;;  %2303 = vmatprep.subr.bf16.mxu1 %v2500_v1 }
  0x28   : > { %852 = vmatpush1.bf16.msra.mxu0 %v2360_v11  ;;  %2319 = vmatpush1.bf16.msra.mxu1 %v2360_v11  ;;  %v2430_v11 = vld [vmem:[%s2576_s7 + $0xe0] ss:$8 sps:$4 sm:$0xff]  }
  0x29   : > { %853 = vmatprep.subr.bf16.mxu0 %v2500_v1  ;;  %2304 = vmatprep.subr.bf16.mxu1 %v2500_v1 }
  0x2c   : > { %854 = vmatpush1.bf16.msra.mxu0 %v2361_v12  ;;  %2320 = vmatpush1.bf16.msra.mxu1 %v2361_v12  ;;  %v2466_v12 = vld [vmem:[%s2576_s7 + $0x200] ss:$8 sps:$4 sm:$0xff]  }
  0x2d   : > { %855 = vmatprep.subr.bf16.mxu0 %v2500_v1  ;;  %2305 = vmatprep.subr.bf16.mxu1 %v2500_v1 }
  0x30   : > { %856 = vmatpush1.bf16.msra.mxu0 %v2362_v13  ;;  %2321 = vmatpush1.bf16.msra.mxu1 %v2362_v13  ;;  %v2434_v13 = vld [vmem:[%s2576_s7 + $0xf4] ss:$8 sps:$4 sm:$0xff]  }
  0x31   : > { %857 = vmatprep.subr.bf16.mxu0 %v2500_v1  ;;  %2306 = vmatprep.subr.bf16.mxu1 %v2500_v1 }
  0x34   : > { %858 = vmatpush1.bf16.msra.mxu0 %v2363_v14  ;;  %2322 = vmatpush1.bf16.msra.mxu1 %v2363_v14  ;;  %v2467_v14 = vld [vmem:[%s2576_s7 + $0x214] ss:$8 sps:$4 sm:$0xff]  }
  0x35   : > { %859 = vmatprep.subr.bf16.mxu0 %v2500_v1  ;;  %2307 = vmatprep.subr.bf16.mxu1 %v2500_v1 }
  0x38   : > { %860 = vmatpush1.bf16.msra.mxu0 %v2364_v15  ;;  %2323 = vmatpush1.bf16.msra.mxu1 %v2364_v15  ;;  %v2436_v15 = vld [vmem:[%s2576_s7 + $0xf0] ss:$8 sps:$4 sm:$0xff]  }
  0x39   : > { %861 = vmatprep.subr.bf16.mxu0 %v2500_v1  ;;  %2308 = vmatprep.subr.bf16.mxu1 %v2500_v1 }
  0x3c   : > { %862 = vmatpush1.bf16.msra.mxu0 %v2365_v16  ;;  %2324 = vmatpush1.bf16.msra.mxu1 %v2365_v16  ;;  %v2469_v16 = vld [vmem:[%s2576_s7 + $0x210] ss:$8 sps:$4 sm:$0xff]  }
  0x3d   : > { %863 = vmatprep.subr.bf16.mxu0 %v2500_v1  ;;  %2309 = vmatprep.subr.bf16.mxu1 %v2500_v1 }
  0x40   : > { %864 = vmatpush1.bf16.msra.mxu0 %v2366_v17  ;;  %2325 = vmatpush1.bf16.msra.mxu1 %v2366_v17  ;;  %v2440_v17 = vld [vmem:[%s2576_s7 + $0x104] ss:$8 sps:$4 sm:$0xff]  }
  0x41   : > { %865 = vmatprep.subr.bf16.mxu0 %v2500_v1  ;;  %2310 = vmatprep.subr.bf16.mxu1 %v2500_v1  ;;  %v2416_v1 = vld [vmem:[%s2576_s7 + $0xc4] ss:$8 sps:$4 sm:$0xff]  }
  0x44   : > { %866 = vmatpush1.bf16.msra.mxu0 %v2367_v18  ;;  %2326 = vmatpush1.bf16.msra.mxu1 %v2367_v18  ;;  %v2470_v18 = vld [vmem:[%s2576_s7 + $0x224] ss:$8 sps:$4 sm:$0xff]  }
  0x47   : > { %868 = vmatmul.mubr.bf16.vlgmr.msra.gmra.mrb[0].mxu0 %v2368_v19  ;;  %1012 = vmatmul.mubr.bf16.vlgmr.msra.gmra.mrb[0].mxu1 %v2395_v20  ;;  %v2442_v19 = vld [vmem:[%s2576_s7 + $0x100] ss:$8 sps:$4 sm:$0xff]  }
  0x48   : > { %875 = vmatprep.mubr.bf16.mxu0 %v2371_v21  ;;  %1019 = vmatprep.mubr.bf16.mxu1 %v2401_v22  ;;  %v2472_v20 = vld [vmem:[%s2576_s7 + $0x220] ss:$8 sps:$4 sm:$0xff]   ;;  %v2446_v21 = vld [vmem:[%s2576_s7 + $0x114] ss:$8 sps:$4 sm:$0xff]  }
  0x49   : > { %v2473_v22 = vld [vmem:[%s2576_s7 + $0x234] ss:$8 sps:$4 sm:$0xff]  }
  0x4f   : > { %876 = vmatmul.mubr.bf16.gmra.mrb[4].mxu0 %v2373_v23  ;;  %1020 = vmatmul.mubr.bf16.gmra.mrb[4].mxu1 %v2403_v24  ;;  %v2448_v23 = vld [vmem:[%s2576_s7 + $0x110] ss:$8 sps:$4 sm:$0xff]  }
  0x50   : > { %883 = vmatprep.mubr.bf16.mxu0 %v2374_v25  ;;  %1027 = vmatprep.mubr.bf16.mxu1 %v2407_v26  ;;  %v2475_v24 = vld [vmem:[%s2576_s7 + $0x230] ss:$8 sps:$4 sm:$0xff]  }
  0x57   : > { %884 = vmatmul.mubr.bf16.gmra.mrb[8].mxu0 %v2376_v27  ;;  %1028 = vmatmul.mubr.bf16.gmra.mrb[8].mxu1 %v2409_v28 }
  0x58   : > { %891 = vmatprep.mubr.bf16.mxu0 %v2377_v29  ;;  %1035 = vmatprep.mubr.bf16.mxu1 %v2413_v30 }
  0x5f   : > { %892 = vmatmul.mubr.bf16.gmra.mrb[12].mxu0 %v2379_v31  ;;  %1036 = vmatmul.mubr.bf16.gmra.mrb[12].mxu1 %v2415_v32 }
  0x60   : > { %899 = vmatprep.mubr.bf16.mxu0 %v2380_v33  ;;  %1043 = vmatprep.mubr.bf16.mxu1 %v2419_v34 }
  0x67   : > { %900 = vmatmul.mubr.bf16.gmra.mrb[16].mxu0 %v2382_v35  ;;  %1044 = vmatmul.mubr.bf16.gmra.mrb[16].mxu1 %v2421_v36 }
  0x68   : > { %907 = vmatprep.mubr.bf16.mxu0 %v2383_v37  ;;  %1051 = vmatprep.mubr.bf16.mxu1 %v2425_v38 }
  0x6f   : > { %908 = vmatmul.mubr.bf16.gmra.mrb[20].mxu0 %v2385_v39  ;;  %1052 = vmatmul.mubr.bf16.gmra.mrb[20].mxu1 %v2427_v40 }
  0x70   : > { %915 = vmatprep.mubr.bf16.mxu0 %v2386_v41  ;;  %1059 = vmatprep.mubr.bf16.mxu1 %v2431_v42 }
  0x77   : > { %916 = vmatmul.mubr.bf16.gmra.mrb[24].mxu0 %v2388_v43  ;;  %1060 = vmatmul.mubr.bf16.gmra.mrb[24].mxu1 %v2433_v44 }
  0x78   : > { %923 = vmatprep.mubr.bf16.mxu0 %v2389_v45  ;;  %1067 = vmatprep.mubr.bf16.mxu1 %v2437_v46 }
  0x7f   : > { %924 = vmatmul.mubr.bf16.gmra.mrb[28].mxu0 %v2391_v47  ;;  %1068 = vmatmul.mubr.bf16.gmra.mrb[28].mxu1 %v2439_v48 }
  0x80   : > { %931 = vmatprep.mubr.bf16.mxu0 %v2392_v49  ;;  %1075 = vmatprep.mubr.bf16.mxu1 %v2443_v50 }
  0x87   : > { %932 = vmatmul.mubr.bf16.gmra.mrb[32].mxu0 %v2394_v51  ;;  %1076 = vmatmul.mubr.bf16.gmra.mrb[32].mxu1 %v2445_v52 }
  0x88   : > { %939 = vmatprep.mubr.bf16.mxu0 %v2398_v53  ;;  %1083 = vmatprep.mubr.bf16.mxu1 %v2449_v54 }
  0x8f   : > { %940 = vmatmul.mubr.bf16.gmra.mrb[36].mxu0 %v2400_v55  ;;  %1084 = vmatmul.mubr.bf16.gmra.mrb[36].mxu1 %v2451_v56 }
  0x90   : > { %947 = vmatprep.mubr.bf16.mxu0 %v2404_v57  ;;  %1091 = vmatprep.mubr.bf16.mxu1 %v2452_v58 }
  0x97   : > { %948 = vmatmul.mubr.bf16.gmra.mrb[40].mxu0 %v2406_v59  ;;  %1092 = vmatmul.mubr.bf16.gmra.mrb[40].mxu1 %v2454_v60 }
  0x98   : > { %955 = vmatprep.mubr.bf16.mxu0 %v2410_v61  ;;  %1099 = vmatprep.mubr.bf16.mxu1 %v2455_v62 }
  0x9f   : > { %956 = vmatmul.mubr.bf16.gmra.mrb[44].mxu0 %v2412_v63  ;;  %1100 = vmatmul.mubr.bf16.gmra.mrb[44].mxu1 %v2457_v0 }
  0xa0   : > { %963 = vmatprep.mubr.bf16.mxu0 %v2416_v1  ;;  %1107 = vmatprep.mubr.bf16.mxu1 %v2458_v2 }
  0xa7   : > { %964 = vmatmul.mubr.bf16.gmra.mrb[48].mxu0 %v2418_v3  ;;  %1108 = vmatmul.mubr.bf16.gmra.mrb[48].mxu1 %v2460_v4 }
  0xa8   : > { %971 = vmatprep.mubr.bf16.mxu0 %v2422_v5  ;;  %1115 = vmatprep.mubr.bf16.mxu1 %v2461_v6 }
  0xaf   : > { %972 = vmatmul.mubr.bf16.gmra.mrb[52].mxu0 %v2424_v7  ;;  %1116 = vmatmul.mubr.bf16.gmra.mrb[52].mxu1 %v2463_v8 }
  0xb0   : > { %979 = vmatprep.mubr.bf16.mxu0 %v2428_v9  ;;  %1123 = vmatprep.mubr.bf16.mxu1 %v2464_v10 }
  0xb7   : > { %980 = vmatmul.mubr.bf16.gmra.mrb[56].mxu0 %v2430_v11  ;;  %1124 = vmatmul.mubr.bf16.gmra.mrb[56].mxu1 %v2466_v12 }
  0xb8   : > { %987 = vmatprep.mubr.bf16.mxu0 %v2434_v13  ;;  %1131 = vmatprep.mubr.bf16.mxu1 %v2467_v14 }
  0xbf   : > { %988 = vmatmul.mubr.bf16.gmra.mrb[60].mxu0 %v2436_v15  ;;  %1132 = vmatmul.mubr.bf16.gmra.mrb[60].mxu1 %v2469_v16 }
  0xc0   : > { %995 = vmatprep.mubr.bf16.mxu0 %v2440_v17  ;;  %1139 = vmatprep.mubr.bf16.mxu1 %v2470_v18 }
  0xc7   : > { %996 = vmatmul.mubr.bf16.gmra.mrb[64].mxu0 %v2442_v19  ;;  %1140 = vmatmul.mubr.bf16.gmra.mrb[64].mxu1 %v2472_v20 }
  0xc8   : > { %1003 = vmatprep.mubr.bf16.mxu0 %v2446_v21  ;;  %1147 = vmatprep.mubr.bf16.mxu1 %v2473_v22 }
  0xcf   : > { %1004 = vmatmul.mubr.bf16.gmra.mrb[68].mxu0 %v2448_v23  ;;  %1148 = vmatmul.mubr.bf16.gmra.mrb[68].mxu1 %v2475_v24 }
 0x11a   : > { %v869_v25 = vpop.f32.mrb[0].mxu0  ;;  %v2713_v26 = vpop.f32.mrb[0].mxu1 }
 0x11b   : > { %v2223_v27 = vpack.c.bf16 %v869_v25, %v869_v25  ;;  %v1669_v28 = vmul.f32 %v869_v25, %v869_v25  ;;  %v871_v29 = vpop.f32.mrb[1].mxu0  ;;  %v2259_v30 = vpack.c.bf16 %v2713_v26, %v2713_v26  ;;  %v1015_v31 = vpop.f32.mrb[1].mxu1  ;;  %v1518_v34 = vsel %vm1517_vm1, %v869_v25, 0.0 }
 0x11c   : > { %v872_v32 = vpop.f32.mrb[2].mxu0  ;;  %v2717_v33 = vpop.f32.mrb[2].mxu1 }
 0x11d   : > { %1445 = vst.msk [vmem:[%s2711_s13] sm:$0xf] %vm1444_vm0, %v2223_v27  ;;  %v2224_v35 = vpack.c.bf16 %v872_v32, %v872_v32  ;;  %v1519_v36 = vsel %vm1517_vm1, %v872_v32, 0.0  ;;  %v1670_v37 = vmul.f32 %v872_v32, %v872_v32  ;;  %v874_v38 = vpop.f32.mrb[3].mxu0  ;;  %1481 = vst.msk [vmem:[%s2711_s13 + $0x90] sm:$0xf] %vm1444_vm0, %v2259_v30  ;;  %v2260_v41 = vpack.c.bf16 %v2717_v33, %v2717_v33 }
 0x11e   : > { %v1018_v39 = vpop.f32.mrb[3].mxu1  ;;  %v1520_v40 = vadd.f32 %v1519_v36, %v1518_v34  ;;  %v1741_v42 = vsel %vm1517_vm1, %v1669_v28, 0.0 }
 0x11f   : > { %1446 = vst.msk [vmem:[%s2711_s13 + $0x4] sm:$0xf] %vm1444_vm0, %v2224_v35  ;;  %v1742_v43 = vsel %vm1517_vm1, %v1670_v37, 0.0  ;;  %1482 = vst.msk [vmem:[%s2711_s13 + $0x94] sm:$0xf] %vm1444_vm0, %v2260_v41 }
 0x120   : > { %v1743_v44 = vadd.f32 %v1742_v43, %v1741_v42 }
 0x122   : > { %v877_v45 = vpop.f32.mrb[4].mxu0  ;;  %v2733_v46 = vpop.f32.mrb[4].mxu1 }
 0x123   : > { %v2225_v47 = vpack.c.bf16 %v877_v45, %v877_v45  ;;  %v1521_v48 = vsel %vm1517_vm1, %v877_v45, 0.0  ;;  %v1671_v49 = vmul.f32 %v877_v45, %v877_v45  ;;  %v879_v50 = vpop.f32.mrb[5].mxu0  ;;  %v2261_v51 = vpack.c.bf16 %v2733_v46, %v2733_v46  ;;  %v1023_v52 = vpop.f32.mrb[5].mxu1 }
 0x124   : > { %v1522_v53 = vadd.f32 %v1521_v48, %v1520_v40  ;;  %v880_v54 = vpop.f32.mrb[6].mxu0  ;;  %v2738_v55 = vpop.f32.mrb[6].mxu1 }
 0x125   : > { %1447 = vst.msk [vmem:[%s2711_s13 + $0x8] sm:$0xf] %vm1444_vm0, %v2225_v47  ;;  %v1744_v56 = vsel %vm1517_vm1, %v1671_v49, 0.0  ;;  %v2226_v57 = vpack.c.bf16 %v880_v54, %v880_v54  ;;  %v1523_v58 = vsel %vm1517_vm1, %v880_v54, 0.0  ;;  %v1672_v59 = vmul.f32 %v880_v54, %v880_v54  ;;  %v882_v60 = vpop.f32.mrb[7].mxu0  ;;  %v1026_v61 = vpop.f32.mrb[7].mxu1 }
 0x126   : > { %1483 = vst.msk [vmem:[%s2711_s13 + $0x98] sm:$0xf] %vm1444_vm0, %v2261_v51  ;;  %v1745_v62 = vadd.f32 %v1744_v56, %v1743_v44  ;;  %v1524_v63 = vadd.f32 %v1523_v58, %v1522_v53  ;;  %v2262_v0 = vpack.c.bf16 %v2738_v55, %v2738_v55 }
 0x127   : > { %1448 = vst.msk [vmem:[%s2711_s13 + $0xc] sm:$0xf] %vm1444_vm0, %v2226_v57  ;;  %v1746_v1 = vsel %vm1517_vm1, %v1672_v59, 0.0 }
 0x128   : > { %v1747_v2 = vadd.f32 %v1746_v1, %v1745_v62  ;;  %1484 = vst.msk [vmem:[%s2711_s13 + $0x9c] sm:$0xf] %vm1444_vm0, %v2262_v0 }
 0x12a   : > { %v885_v3 = vpop.f32.mrb[8].mxu0  ;;  %v2753_v4 = vpop.f32.mrb[8].mxu1 }
 0x12b   : > { %v2227_v5 = vpack.c.bf16 %v885_v3, %v885_v3  ;;  %v1525_v6 = vsel %vm1517_vm1, %v885_v3, 0.0  ;;  %v1673_v7 = vmul.f32 %v885_v3, %v885_v3  ;;  %v887_v8 = vpop.f32.mrb[9].mxu0  ;;  %v2263_v9 = vpack.c.bf16 %v2753_v4, %v2753_v4  ;;  %v1031_v10 = vpop.f32.mrb[9].mxu1 }
 0x12c   : > { %v1526_v11 = vadd.f32 %v1525_v6, %v1524_v63  ;;  %v888_v12 = vpop.f32.mrb[10].mxu0  ;;  %v2758_v13 = vpop.f32.mrb[10].mxu1 }
 0x12d   : > { %1449 = vst.msk [vmem:[%s2711_s13 + $0x10] sm:$0xf] %vm1444_vm0, %v2227_v5  ;;  %v1748_v14 = vsel %vm1517_vm1, %v1673_v7, 0.0  ;;  %v2228_v15 = vpack.c.bf16 %v888_v12, %v888_v12  ;;  %v1527_v16 = vsel %vm1517_vm1, %v888_v12, 0.0  ;;  %v1674_v17 = vmul.f32 %v888_v12, %v888_v12  ;;  %v890_v18 = vpop.f32.mrb[11].mxu0  ;;  %v1034_v19 = vpop.f32.mrb[11].mxu1 }
 0x12e   : > { %1485 = vst.msk [vmem:[%s2711_s13 + $0xa0] sm:$0xf] %vm1444_vm0, %v2263_v9  ;;  %v1749_v20 = vadd.f32 %v1748_v14, %v1747_v2  ;;  %v1528_v21 = vadd.f32 %v1527_v16, %v1526_v11  ;;  %v2264_v22 = vpack.c.bf16 %v2758_v13, %v2758_v13 }
 0x12f   : > { %1450 = vst.msk [vmem:[%s2711_s13 + $0x14] sm:$0xf] %vm1444_vm0, %v2228_v15  ;;  %v1750_v23 = vsel %vm1517_vm1, %v1674_v17, 0.0 }
 0x130   : > { %v1751_v24 = vadd.f32 %v1750_v23, %v1749_v20  ;;  %1486 = vst.msk [vmem:[%s2711_s13 + $0xa4] sm:$0xf] %vm1444_vm0, %v2264_v22 }
 0x132   : > { %v893_v25 = vpop.f32.mrb[12].mxu0  ;;  %v2773_v27 = vpop.f32.mrb[12].mxu1 }
 0x133   : > { %v2229_v28 = vpack.c.bf16 %v893_v25, %v893_v25  ;;  %v1529_v29 = vsel %vm1517_vm1, %v893_v25, 0.0  ;;  %v1675_v30 = vmul.f32 %v893_v25, %v893_v25  ;;  %v895_v31 = vpop.f32.mrb[13].mxu0  ;;  %v2265_v32 = vpack.c.bf16 %v2773_v27, %v2773_v27  ;;  %v1039_v34 = vpop.f32.mrb[13].mxu1 }
 0x134   : > { %v1530_v35 = vadd.f32 %v1529_v29, %v1528_v21  ;;  %v896_v36 = vpop.f32.mrb[14].mxu0  ;;  %v2778_v37 = vpop.f32.mrb[14].mxu1 }
 0x135   : > { %1451 = vst.msk [vmem:[%s2711_s13 + $0x18] sm:$0xf] %vm1444_vm0, %v2229_v28  ;;  %v1752_v38 = vsel %vm1517_vm1, %v1675_v30, 0.0  ;;  %v2230_v39 = vpack.c.bf16 %v896_v36, %v896_v36  ;;  %v1531_v40 = vsel %vm1517_vm1, %v896_v36, 0.0  ;;  %v1676_v41 = vmul.f32 %v896_v36, %v896_v36  ;;  %v898_v42 = vpop.f32.mrb[15].mxu0  ;;  %v1042_v43 = vpop.f32.mrb[15].mxu1 }
 0x136   : > { %1487 = vst.msk [vmem:[%s2711_s13 + $0xa8] sm:$0xf] %vm1444_vm0, %v2265_v32  ;;  %v1753_v44 = vadd.f32 %v1752_v38, %v1751_v24  ;;  %v1532_v45 = vadd.f32 %v1531_v40, %v1530_v35  ;;  %v2266_v47 = vpack.c.bf16 %v2778_v37, %v2778_v37 }
 0x137   : > { %1452 = vst.msk [vmem:[%s2711_s13 + $0x1c] sm:$0xf] %vm1444_vm0, %v2230_v39  ;;  %v1754_v48 = vsel %vm1517_vm1, %v1676_v41, 0.0 }
 0x138   : > { %v1755_v49 = vadd.f32 %v1754_v48, %v1753_v44  ;;  %1488 = vst.msk [vmem:[%s2711_s13 + $0xac] sm:$0xf] %vm1444_vm0, %v2266_v47 }
 0x13a   : > { %v901_v50 = vpop.f32.mrb[16].mxu0  ;;  %v2793_v51 = vpop.f32.mrb[16].mxu1 }
 0x13b   : > { %v2231_v52 = vpack.c.bf16 %v901_v50, %v901_v50  ;;  %v1533_v53 = vsel %vm1517_vm1, %v901_v50, 0.0  ;;  %v1677_v54 = vmul.f32 %v901_v50, %v901_v50  ;;  %v903_v56 = vpop.f32.mrb[17].mxu0  ;;  %v2267_v57 = vpack.c.bf16 %v2793_v51, %v2793_v51  ;;  %v1047_v58 = vpop.f32.mrb[17].mxu1 }
 0x13c   : > { %v1534_v59 = vadd.f32 %v1533_v53, %v1532_v45  ;;  %v904_v60 = vpop.f32.mrb[18].mxu0  ;;  %v2798_v61 = vpop.f32.mrb[18].mxu1 }
 0x13d   : > { %1453 = vst.msk [vmem:[%s2711_s13 + $0x20] sm:$0xf] %vm1444_vm0, %v2231_v52  ;;  %v1756_v62 = vsel %vm1517_vm1, %v1677_v54, 0.0  ;;  %v2232_v63 = vpack.c.bf16 %v904_v60, %v904_v60  ;;  %v1535_v0 = vsel %vm1517_vm1, %v904_v60, 0.0  ;;  %v1678_v1 = vmul.f32 %v904_v60, %v904_v60  ;;  %v906_v2 = vpop.f32.mrb[19].mxu0  ;;  %v1050_v3 = vpop.f32.mrb[19].mxu1 }
 0x13e   : > { %1489 = vst.msk [vmem:[%s2711_s13 + $0xb0] sm:$0xf] %vm1444_vm0, %v2267_v57  ;;  %v1757_v5 = vadd.f32 %v1756_v62, %v1755_v49  ;;  %v1536_v6 = vadd.f32 %v1535_v0, %v1534_v59  ;;  %v2268_v7 = vpack.c.bf16 %v2798_v61, %v2798_v61 }
 0x13f   : > { %1454 = vst.msk [vmem:[%s2711_s13 + $0x24] sm:$0xf] %vm1444_vm0, %v2232_v63  ;;  %v1758_v8 = vsel %vm1517_vm1, %v1678_v1, 0.0 }
 0x140   : > { %v1759_v9 = vadd.f32 %v1758_v8, %v1757_v5  ;;  %1490 = vst.msk [vmem:[%s2711_s13 + $0xb4] sm:$0xf] %vm1444_vm0, %v2268_v7 }
 0x142   : > { %v909_v10 = vpop.f32.mrb[20].mxu0  ;;  %v2813_v11 = vpop.f32.mrb[20].mxu1 }
 0x143   : > { %v2233_v12 = vpack.c.bf16 %v909_v10, %v909_v10  ;;  %v1537_v14 = vsel %vm1517_vm1, %v909_v10, 0.0  ;;  %v1679_v15 = vmul.f32 %v909_v10, %v909_v10  ;;  %v911_v16 = vpop.f32.mrb[21].mxu0  ;;  %v2269_v17 = vpack.c.bf16 %v2813_v11, %v2813_v11  ;;  %v1055_v18 = vpop.f32.mrb[21].mxu1 }
 0x144   : > { %v1538_v19 = vadd.f32 %v1537_v14, %v1536_v6  ;;  %v912_v20 = vpop.f32.mrb[22].mxu0  ;;  %v2818_v21 = vpop.f32.mrb[22].mxu1 }
 0x145   : > { %1455 = vst.msk [vmem:[%s2711_s13 + $0x28] sm:$0xf] %vm1444_vm0, %v2233_v12  ;;  %v1760_v22 = vsel %vm1517_vm1, %v1679_v15, 0.0  ;;  %v2234_v23 = vpack.c.bf16 %v912_v20, %v912_v20  ;;  %v1539_v24 = vsel %vm1517_vm1, %v912_v20, 0.0  ;;  %v1680_v25 = vmul.f32 %v912_v20, %v912_v20  ;;  %v914_v28 = vpop.f32.mrb[23].mxu0  ;;  %v1058_v29 = vpop.f32.mrb[23].mxu1 }
 0x146   : > { %1491 = vst.msk [vmem:[%s2711_s13 + $0xb8] sm:$0xf] %vm1444_vm0, %v2269_v17  ;;  %v1761_v30 = vadd.f32 %v1760_v22, %v1759_v9  ;;  %v1540_v31 = vadd.f32 %v1539_v24, %v1538_v19  ;;  %v2270_v32 = vpack.c.bf16 %v2818_v21, %v2818_v21 }
 0x147   : > { %1456 = vst.msk [vmem:[%s2711_s13 + $0x2c] sm:$0xf] %vm1444_vm0, %v2234_v23  ;;  %v1762_v34 = vsel %vm1517_vm1, %v1680_v25, 0.0 }
 0x148   : > { %v1763_v35 = vadd.f32 %v1762_v34, %v1761_v30  ;;  %1492 = vst.msk [vmem:[%s2711_s13 + $0xbc] sm:$0xf] %vm1444_vm0, %v2270_v32 }
 0x14a   : > { %v917_v36 = vpop.f32.mrb[24].mxu0  ;;  %v2833_v38 = vpop.f32.mrb[24].mxu1 }
 0x14b   : > { %v2235_v39 = vpack.c.bf16 %v917_v36, %v917_v36  ;;  %v1541_v40 = vsel %vm1517_vm1, %v917_v36, 0.0  ;;  %v1681_v41 = vmul.f32 %v917_v36, %v917_v36  ;;  %v919_v42 = vpop.f32.mrb[25].mxu0  ;;  %v2271_v43 = vpack.c.bf16 %v2833_v38, %v2833_v38  ;;  %v1063_v44 = vpop.f32.mrb[25].mxu1 }
 0x14c   : > { %v1542_v45 = vadd.f32 %v1541_v40, %v1540_v31  ;;  %v920_v47 = vpop.f32.mrb[26].mxu0  ;;  %v2838_v48 = vpop.f32.mrb[26].mxu1 }
 0x14d   : > { %1457 = vst.msk [vmem:[%s2711_s13 + $0x30] sm:$0xf] %vm1444_vm0, %v2235_v39  ;;  %v1764_v49 = vsel %vm1517_vm1, %v1681_v41, 0.0  ;;  %v2236_v50 = vpack.c.bf16 %v920_v47, %v920_v47  ;;  %v1543_v52 = vsel %vm1517_vm1, %v920_v47, 0.0  ;;  %v1682_v53 = vmul.f32 %v920_v47, %v920_v47  ;;  %v922_v54 = vpop.f32.mrb[27].mxu0  ;;  %v1066_v56 = vpop.f32.mrb[27].mxu1 }
 0x14e   : > { %1493 = vst.msk [vmem:[%s2711_s13 + $0xc0] sm:$0xf] %vm1444_vm0, %v2271_v43  ;;  %v1765_v57 = vadd.f32 %v1764_v49, %v1763_v35  ;;  %v1544_v58 = vadd.f32 %v1543_v52, %v1542_v45  ;;  %v2272_v59 = vpack.c.bf16 %v2838_v48, %v2838_v48 }
 0x14f   : > { %1458 = vst.msk [vmem:[%s2711_s13 + $0x34] sm:$0xf] %vm1444_vm0, %v2236_v50  ;;  %v1766_v60 = vsel %vm1517_vm1, %v1682_v53, 0.0 }
 0x150   : > { %v1767_v62 = vadd.f32 %v1766_v60, %v1765_v57  ;;  %1494 = vst.msk [vmem:[%s2711_s13 + $0xc4] sm:$0xf] %vm1444_vm0, %v2272_v59 }
 0x152   : > { %v925_v63 = vpop.f32.mrb[28].mxu0  ;;  %v2853_v0 = vpop.f32.mrb[28].mxu1 }
 0x153   : > { %v2237_v1 = vpack.c.bf16 %v925_v63, %v925_v63  ;;  %v1545_v2 = vsel %vm1517_vm1, %v925_v63, 0.0  ;;  %v1683_v3 = vmul.f32 %v925_v63, %v925_v63  ;;  %v927_v5 = vpop.f32.mrb[29].mxu0  ;;  %v2273_v6 = vpack.c.bf16 %v2853_v0, %v2853_v0  ;;  %v1071_v7 = vpop.f32.mrb[29].mxu1 }
 0x154   : > { %v1546_v8 = vadd.f32 %v1545_v2, %v1544_v58  ;;  %v928_v9 = vpop.f32.mrb[30].mxu0  ;;  %v2858_v10 = vpop.f32.mrb[30].mxu1 }
 0x155   : > { %1459 = vst.msk [vmem:[%s2711_s13 + $0x38] sm:$0xf] %vm1444_vm0, %v2237_v1  ;;  %v1768_v12 = vsel %vm1517_vm1, %v1683_v3, 0.0  ;;  %v2238_v14 = vpack.c.bf16 %v928_v9, %v928_v9  ;;  %v1547_v15 = vsel %vm1517_vm1, %v928_v9, 0.0  ;;  %v1684_v16 = vmul.f32 %v928_v9, %v928_v9  ;;  %v930_v17 = vpop.f32.mrb[31].mxu0  ;;  %v1074_v18 = vpop.f32.mrb[31].mxu1 }
 0x156   : > { %1495 = vst.msk [vmem:[%s2711_s13 + $0xc8] sm:$0xf] %vm1444_vm0, %v2273_v6  ;;  %v1769_v19 = vadd.f32 %v1768_v12, %v1767_v62  ;;  %v1548_v20 = vadd.f32 %v1547_v15, %v1546_v8  ;;  %v2274_v22 = vpack.c.bf16 %v2858_v10, %v2858_v10 }
 0x157   : > { %1460 = vst.msk [vmem:[%s2711_s13 + $0x3c] sm:$0xf] %vm1444_vm0, %v2238_v14  ;;  %v1770_v23 = vsel %vm1517_vm1, %v1684_v16, 0.0 }
 0x158   : > { %v1771_v24 = vadd.f32 %v1770_v23, %v1769_v19  ;;  %1496 = vst.msk [vmem:[%s2711_s13 + $0xcc] sm:$0xf] %vm1444_vm0, %v2274_v22 }
 0x15a   : > { %v933_v25 = vpop.f32.mrb[32].mxu0  ;;  %v2873_v28 = vpop.f32.mrb[32].mxu1 }
 0x15b   : > { %v2239_v29 = vpack.c.bf16 %v933_v25, %v933_v25  ;;  %v1549_v30 = vsel %vm1517_vm1, %v933_v25, 0.0  ;;  %v1685_v31 = vmul.f32 %v933_v25, %v933_v25  ;;  %v935_v32 = vpop.f32.mrb[33].mxu0  ;;  %v2275_v34 = vpack.c.bf16 %v2873_v28, %v2873_v28  ;;  %v1079_v35 = vpop.f32.mrb[33].mxu1 }
 0x15c   : > { %v1550_v36 = vadd.f32 %v1549_v30, %v1548_v20  ;;  %v936_v39 = vpop.f32.mrb[34].mxu0  ;;  %v2878_v40 = vpop.f32.mrb[34].mxu1 }
 0x15d   : > { %1461 = vst.msk [vmem:[%s2711_s13 + $0x40] sm:$0xf] %vm1444_vm0, %v2239_v29  ;;  %v1772_v41 = vsel %vm1517_vm1, %v1685_v31, 0.0  ;;  %v2240_v42 = vpack.c.bf16 %v936_v39, %v936_v39  ;;  %v1551_v43 = vsel %vm1517_vm1, %v936_v39, 0.0  ;;  %v1686_v44 = vmul.f32 %v936_v39, %v936_v39  ;;  %v938_v45 = vpop.f32.mrb[35].mxu0  ;;  %v1082_v47 = vpop.f32.mrb[35].mxu1 }
 0x15e   : > { %1497 = vst.msk [vmem:[%s2711_s13 + $0xd0] sm:$0xf] %vm1444_vm0, %v2275_v34  ;;  %v1773_v49 = vadd.f32 %v1772_v41, %v1771_v24  ;;  %v1552_v50 = vadd.f32 %v1551_v43, %v1550_v36  ;;  %v2276_v52 = vpack.c.bf16 %v2878_v40, %v2878_v40 }
 0x15f   : > { %1462 = vst.msk [vmem:[%s2711_s13 + $0x44] sm:$0xf] %vm1444_vm0, %v2240_v42  ;;  %v1774_v53 = vsel %vm1517_vm1, %v1686_v44, 0.0 }
 0x160   : > { %v1775_v54 = vadd.f32 %v1774_v53, %v1773_v49  ;;  %1498 = vst.msk [vmem:[%s2711_s13 + $0xd4] sm:$0xf] %vm1444_vm0, %v2276_v52 }
 0x162   : > { %v941_v56 = vpop.f32.mrb[36].mxu0  ;;  %v2893_v57 = vpop.f32.mrb[36].mxu1 }
 0x163   : > { %v2241_v58 = vpack.c.bf16 %v941_v56, %v941_v56  ;;  %v1553_v59 = vsel %vm1517_vm1, %v941_v56, 0.0  ;;  %v1687_v60 = vmul.f32 %v941_v56, %v941_v56  ;;  %v943_v62 = vpop.f32.mrb[37].mxu0  ;;  %v2277_v63 = vpack.c.bf16 %v2893_v57, %v2893_v57  ;;  %v1087_v1 = vpop.f32.mrb[37].mxu1 }
 0x164   : > { %v1554_v2 = vadd.f32 %v1553_v59, %v1552_v50  ;;  %v944_v3 = vpop.f32.mrb[38].mxu0  ;;  %v2898_v5 = vpop.f32.mrb[38].mxu1 }
 0x165   : > { %1463 = vst.msk [vmem:[%s2711_s13 + $0x48] sm:$0xf] %vm1444_vm0, %v2241_v58  ;;  %v1776_v6 = vsel %vm1517_vm1, %v1687_v60, 0.0  ;;  %v2242_v7 = vpack.c.bf16 %v944_v3, %v944_v3  ;;  %v1555_v8 = vsel %vm1517_vm1, %v944_v3, 0.0  ;;  %v1688_v9 = vmul.f32 %v944_v3, %v944_v3  ;;  %v946_v12 = vpop.f32.mrb[39].mxu0  ;;  %v1090_v14 = vpop.f32.mrb[39].mxu1 }
 0x166   : > { %1499 = vst.msk [vmem:[%s2711_s13 + $0xd8] sm:$0xf] %vm1444_vm0, %v2277_v63  ;;  %v1777_v15 = vadd.f32 %v1776_v6, %v1775_v54  ;;  %v1556_v16 = vadd.f32 %v1555_v8, %v1554_v2  ;;  %v2278_v17 = vpack.c.bf16 %v2898_v5, %v2898_v5 }
 0x167   : > { %1464 = vst.msk [vmem:[%s2711_s13 + $0x4c] sm:$0xf] %vm1444_vm0, %v2242_v7  ;;  %v1778_v18 = vsel %vm1517_vm1, %v1688_v9, 0.0 }
 0x168   : > { %v1779_v19 = vadd.f32 %v1778_v18, %v1777_v15  ;;  %1500 = vst.msk [vmem:[%s2711_s13 + $0xdc] sm:$0xf] %vm1444_vm0, %v2278_v17 }
 0x16a   : > { %v949_v20 = vpop.f32.mrb[40].mxu0  ;;  %v2913_v22 = vpop.f32.mrb[40].mxu1 }
 0x16b   : > { %v2243_v23 = vpack.c.bf16 %v949_v20, %v949_v20  ;;  %v1557_v24 = vsel %vm1517_vm1, %v949_v20, 0.0  ;;  %v1689_v25 = vmul.f32 %v949_v20, %v949_v20  ;;  %v951_v29 = vpop.f32.mrb[41].mxu0  ;;  %v2279_v30 = vpack.c.bf16 %v2913_v22, %v2913_v22  ;;  %v1095_v31 = vpop.f32.mrb[41].mxu1 }
 0x16c   : > { %v1558_v32 = vadd.f32 %v1557_v24, %v1556_v16  ;;  %v952_v34 = vpop.f32.mrb[42].mxu0  ;;  %v2918_v35 = vpop.f32.mrb[42].mxu1 }
 0x16d   : > { %1465 = vst.msk [vmem:[%s2711_s13 + $0x50] sm:$0xf] %vm1444_vm0, %v2243_v23  ;;  %v1780_v36 = vsel %vm1517_vm1, %v1689_v25, 0.0  ;;  %v2244_v39 = vpack.c.bf16 %v952_v34, %v952_v34  ;;  %v1559_v41 = vsel %vm1517_vm1, %v952_v34, 0.0  ;;  %v1690_v42 = vmul.f32 %v952_v34, %v952_v34  ;;  %v954_v43 = vpop.f32.mrb[43].mxu0  ;;  %v1098_v44 = vpop.f32.mrb[43].mxu1 }
 0x16e   : > { %1501 = vst.msk [vmem:[%s2711_s13 + $0xe0] sm:$0xf] %vm1444_vm0, %v2279_v30  ;;  %v1781_v45 = vadd.f32 %v1780_v36, %v1779_v19  ;;  %v1560_v47 = vadd.f32 %v1559_v41, %v1558_v32  ;;  %v2280_v49 = vpack.c.bf16 %v2918_v35, %v2918_v35 }
 0x16f   : > { %1466 = vst.msk [vmem:[%s2711_s13 + $0x54] sm:$0xf] %vm1444_vm0, %v2244_v39  ;;  %v1782_v50 = vsel %vm1517_vm1, %v1690_v42, 0.0 }
 0x170   : > { %v1783_v52 = vadd.f32 %v1782_v50, %v1781_v45  ;;  %1502 = vst.msk [vmem:[%s2711_s13 + $0xe4] sm:$0xf] %vm1444_vm0, %v2280_v49 }
 0x172   : > { %v957_v53 = vpop.f32.mrb[44].mxu0  ;;  %v2933_v54 = vpop.f32.mrb[44].mxu1 }
 0x173   : > { %v2245_v56 = vpack.c.bf16 %v957_v53, %v957_v53  ;;  %v1561_v58 = vsel %vm1517_vm1, %v957_v53, 0.0  ;;  %v1691_v59 = vmul.f32 %v957_v53, %v957_v53  ;;  %v959_v60 = vpop.f32.mrb[45].mxu0  ;;  %v2281_v62 = vpack.c.bf16 %v2933_v54, %v2933_v54  ;;  %v1103_v63 = vpop.f32.mrb[45].mxu1 }
 0x174   : > { %v1562_v1 = vadd.f32 %v1561_v58, %v1560_v47  ;;  %v960_v2 = vpop.f32.mrb[46].mxu0  ;;  %v2938_v3 = vpop.f32.mrb[46].mxu1 }
 0x175   : > { %1467 = vst.msk [vmem:[%s2711_s13 + $0x58] sm:$0xf] %vm1444_vm0, %v2245_v56  ;;  %v1784_v6 = vsel %vm1517_vm1, %v1691_v59, 0.0  ;;  %v2246_v7 = vpack.c.bf16 %v960_v2, %v960_v2  ;;  %v1563_v8 = vsel %vm1517_vm1, %v960_v2, 0.0  ;;  %v1692_v9 = vmul.f32 %v960_v2, %v960_v2  ;;  %v962_v12 = vpop.f32.mrb[47].mxu0  ;;  %v1106_v14 = vpop.f32.mrb[47].mxu1 }
 0x176   : > { %1503 = vst.msk [vmem:[%s2711_s13 + $0xe8] sm:$0xf] %vm1444_vm0, %v2281_v62  ;;  %v1785_v15 = vadd.f32 %v1784_v6, %v1783_v52  ;;  %v1564_v16 = vadd.f32 %v1563_v8, %v1562_v1  ;;  %v2282_v17 = vpack.c.bf16 %v2938_v3, %v2938_v3 }
 0x177   : > { %1468 = vst.msk [vmem:[%s2711_s13 + $0x5c] sm:$0xf] %vm1444_vm0, %v2246_v7  ;;  %v1786_v18 = vsel %vm1517_vm1, %v1692_v9, 0.0 }
 0x178   : > { %v1787_v19 = vadd.f32 %v1786_v18, %v1785_v15  ;;  %1504 = vst.msk [vmem:[%s2711_s13 + $0xec] sm:$0xf] %vm1444_vm0, %v2282_v17 }
 0x17a   : > { %v965_v20 = vpop.f32.mrb[48].mxu0  ;;  %v2953_v23 = vpop.f32.mrb[48].mxu1 }
 0x17b   : > { %v2247_v24 = vpack.c.bf16 %v965_v20, %v965_v20  ;;  %v1565_v25 = vsel %vm1517_vm1, %v965_v20, 0.0  ;;  %v1693_v29 = vmul.f32 %v965_v20, %v965_v20  ;;  %v967_v30 = vpop.f32.mrb[49].mxu0  ;;  %v2283_v31 = vpack.c.bf16 %v2953_v23, %v2953_v23  ;;  %v1111_v32 = vpop.f32.mrb[49].mxu1 }
 0x17c   : > { %v1566_v34 = vadd.f32 %v1565_v25, %v1564_v16  ;;  %v968_v36 = vpop.f32.mrb[50].mxu0  ;;  %v2958_v39 = vpop.f32.mrb[50].mxu1 }
 0x17d   : > { %1469 = vst.msk [vmem:[%s2711_s13 + $0x60] sm:$0xf] %vm1444_vm0, %v2247_v24  ;;  %v1788_v41 = vsel %vm1517_vm1, %v1693_v29, 0.0  ;;  %v2248_v42 = vpack.c.bf16 %v968_v36, %v968_v36  ;;  %v1567_v43 = vsel %vm1517_vm1, %v968_v36, 0.0  ;;  %v1694_v44 = vmul.f32 %v968_v36, %v968_v36  ;;  %v970_v45 = vpop.f32.mrb[51].mxu0  ;;  %v1114_v47 = vpop.f32.mrb[51].mxu1 }
 0x17e   : > { %1505 = vst.msk [vmem:[%s2711_s13 + $0xf0] sm:$0xf] %vm1444_vm0, %v2283_v31  ;;  %v1789_v49 = vadd.f32 %v1788_v41, %v1787_v19  ;;  %v1568_v50 = vadd.f32 %v1567_v43, %v1566_v34  ;;  %v2284_v52 = vpack.c.bf16 %v2958_v39, %v2958_v39 }
 0x17f   : > { %1470 = vst.msk [vmem:[%s2711_s13 + $0x64] sm:$0xf] %vm1444_vm0, %v2248_v42  ;;  %v1790_v53 = vsel %vm1517_vm1, %v1694_v44, 0.0 }
 0x180   : > { %v1791_v56 = vadd.f32 %v1790_v53, %v1789_v49  ;;  %1506 = vst.msk [vmem:[%s2711_s13 + $0xf4] sm:$0xf] %vm1444_vm0, %v2284_v52 }
 0x182   : > { %v973_v58 = vpop.f32.mrb[52].mxu0  ;;  %v2973_v59 = vpop.f32.mrb[52].mxu1 }
 0x183   : > { %v2249_v60 = vpack.c.bf16 %v973_v58, %v973_v58  ;;  %v1569_v62 = vsel %vm1517_vm1, %v973_v58, 0.0  ;;  %v1695_v63 = vmul.f32 %v973_v58, %v973_v58  ;;  %v975_v1 = vpop.f32.mrb[53].mxu0  ;;  %v2285_v2 = vpack.c.bf16 %v2973_v59, %v2973_v59  ;;  %v1119_v6 = vpop.f32.mrb[53].mxu1 }
 0x184   : > { %v1570_v7 = vadd.f32 %v1569_v62, %v1568_v50  ;;  %v976_v8 = vpop.f32.mrb[54].mxu0  ;;  %v2978_v9 = vpop.f32.mrb[54].mxu1 }
 0x185   : > { %1471 = vst.msk [vmem:[%s2711_s13 + $0x68] sm:$0xf] %vm1444_vm0, %v2249_v60  ;;  %v1792_v12 = vsel %vm1517_vm1, %v1695_v63, 0.0  ;;  %v2250_v14 = vpack.c.bf16 %v976_v8, %v976_v8  ;;  %v1571_v15 = vsel %vm1517_vm1, %v976_v8, 0.0  ;;  %v1696_v16 = vmul.f32 %v976_v8, %v976_v8  ;;  %v978_v17 = vpop.f32.mrb[55].mxu0  ;;  %v1122_v18 = vpop.f32.mrb[55].mxu1 }
 0x186   : > { %1507 = vst.msk [vmem:[%s2711_s13 + $0xf8] sm:$0xf] %vm1444_vm0, %v2285_v2  ;;  %v1793_v19 = vadd.f32 %v1792_v12, %v1791_v56  ;;  %v1572_v20 = vadd.f32 %v1571_v15, %v1570_v7  ;;  %v2286_v24 = vpack.c.bf16 %v2978_v9, %v2978_v9 }
 0x187   : > { %1472 = vst.msk [vmem:[%s2711_s13 + $0x6c] sm:$0xf] %vm1444_vm0, %v2250_v14  ;;  %v1794_v25 = vsel %vm1517_vm1, %v1696_v16, 0.0 }
 0x188   : > { %v1795_v29 = vadd.f32 %v1794_v25, %v1793_v19  ;;  %1508 = vst.msk [vmem:[%s2711_s13 + $0xfc] sm:$0xf] %vm1444_vm0, %v2286_v24 }
 0x18a   : > { %v981_v30 = vpop.f32.mrb[56].mxu0  ;;  %v2993_v31 = vpop.f32.mrb[56].mxu1 }
 0x18b   : > { %v2251_v32 = vpack.c.bf16 %v981_v30, %v981_v30  ;;  %v1573_v34 = vsel %vm1517_vm1, %v981_v30, 0.0  ;;  %v1697_v36 = vmul.f32 %v981_v30, %v981_v30  ;;  %v983_v41 = vpop.f32.mrb[57].mxu0  ;;  %v2287_v42 = vpack.c.bf16 %v2993_v31, %v2993_v31  ;;  %v1127_v43 = vpop.f32.mrb[57].mxu1 }
 0x18c   : > { %v1574_v44 = vadd.f32 %v1573_v34, %v1572_v20  ;;  %v984_v45 = vpop.f32.mrb[58].mxu0  ;;  %v2998_v47 = vpop.f32.mrb[58].mxu1 }
 0x18d   : > { %1473 = vst.msk [vmem:[%s2711_s13 + $0x70] sm:$0xf] %vm1444_vm0, %v2251_v32  ;;  %v1796_v49 = vsel %vm1517_vm1, %v1697_v36, 0.0  ;;  %v2252_v50 = vpack.c.bf16 %v984_v45, %v984_v45  ;;  %v1575_v52 = vsel %vm1517_vm1, %v984_v45, 0.0  ;;  %v1698_v53 = vmul.f32 %v984_v45, %v984_v45  ;;  %v986_v56 = vpop.f32.mrb[59].mxu0  ;;  %v1130_v58 = vpop.f32.mrb[59].mxu1 }
 0x18e   : > { %1509 = vst.msk [vmem:[%s2711_s13 + $0x100] sm:$0xf] %vm1444_vm0, %v2287_v42  ;;  %v1797_v60 = vadd.f32 %v1796_v49, %v1795_v29  ;;  %v1576_v62 = vadd.f32 %v1575_v52, %v1574_v44  ;;  %v2288_v63 = vpack.c.bf16 %v2998_v47, %v2998_v47 }
 0x18f   : > { %1474 = vst.msk [vmem:[%s2711_s13 + $0x74] sm:$0xf] %vm1444_vm0, %v2252_v50  ;;  %v1798_v1 = vsel %vm1517_vm1, %v1698_v53, 0.0 }
 0x190   : > { %v1799_v2 = vadd.f32 %v1798_v1, %v1797_v60  ;;  %1510 = vst.msk [vmem:[%s2711_s13 + $0x104] sm:$0xf] %vm1444_vm0, %v2288_v63 }
 0x192   : > { %v989_v6 = vpop.f32.mrb[60].mxu0  ;;  %v3013_v7 = vpop.f32.mrb[60].mxu1 }
 0x193   : > { %v2253_v8 = vpack.c.bf16 %v989_v6, %v989_v6  ;;  %v1577_v12 = vsel %vm1517_vm1, %v989_v6, 0.0  ;;  %v1699_v14 = vmul.f32 %v989_v6, %v989_v6  ;;  %v991_v15 = vpop.f32.mrb[61].mxu0  ;;  %v2289_v16 = vpack.c.bf16 %v3013_v7, %v3013_v7  ;;  %v1135_v17 = vpop.f32.mrb[61].mxu1 }
 0x194   : > { %v1578_v18 = vadd.f32 %v1577_v12, %v1576_v62  ;;  %v992_v19 = vpop.f32.mrb[62].mxu0  ;;  %v3018_v20 = vpop.f32.mrb[62].mxu1 }
 0x195   : > { %1475 = vst.msk [vmem:[%s2711_s13 + $0x78] sm:$0xf] %vm1444_vm0, %v2253_v8  ;;  %v1800_v24 = vsel %vm1517_vm1, %v1699_v14, 0.0  ;;  %v2254_v25 = vpack.c.bf16 %v992_v19, %v992_v19  ;;  %v1579_v29 = vsel %vm1517_vm1, %v992_v19, 0.0  ;;  %v1700_v30 = vmul.f32 %v992_v19, %v992_v19  ;;  %v994_v32 = vpop.f32.mrb[63].mxu0  ;;  %v1138_v34 = vpop.f32.mrb[63].mxu1 }
 0x196   : > { %1511 = vst.msk [vmem:[%s2711_s13 + $0x108] sm:$0xf] %vm1444_vm0, %v2289_v16  ;;  %v1801_v36 = vadd.f32 %v1800_v24, %v1799_v2  ;;  %v1580_v41 = vadd.f32 %v1579_v29, %v1578_v18  ;;  %v2290_v42 = vpack.c.bf16 %v3018_v20, %v3018_v20 }
 0x197   : > { %1476 = vst.msk [vmem:[%s2711_s13 + $0x7c] sm:$0xf] %vm1444_vm0, %v2254_v25  ;;  %v1802_v43 = vsel %vm1517_vm1, %v1700_v30, 0.0 }
 0x198   : > { %v1803_v44 = vadd.f32 %v1802_v43, %v1801_v36  ;;  %1512 = vst.msk [vmem:[%s2711_s13 + $0x10c] sm:$0xf] %vm1444_vm0, %v2290_v42  ;;  %v1705_v43 = vmul.f32 %v2713_v26, %v2713_v26 }
 0x19a   : > { %v997_v45 = vpop.f32.mrb[64].mxu0  ;;  %v3033_v49 = vpop.f32.mrb[64].mxu1 }
 0x19b   : > { %v2255_v50 = vpack.c.bf16 %v997_v45, %v997_v45  ;;  %v1581_v52 = vsel %vm1517_vm1, %v997_v45, 0.0  ;;  %v1701_v53 = vmul.f32 %v997_v45, %v997_v45  ;;  %v999_v56 = vpop.f32.mrb[65].mxu0  ;;  %v2291_v58 = vpack.c.bf16 %v3033_v49, %v3033_v49  ;;  %v1143_v60 = vpop.f32.mrb[65].mxu1 }
 0x19c   : > { %v1582_v62 = vadd.f32 %v1581_v52, %v1580_v41  ;;  %v1000_v63 = vpop.f32.mrb[66].mxu0  ;;  %v3038_v1 = vpop.f32.mrb[66].mxu1 }
 0x19d   : > { %1477 = vst.msk [vmem:[%s2711_s13 + $0x80] sm:$0xf] %vm1444_vm0, %v2255_v50  ;;  %v1804_v2 = vsel %vm1517_vm1, %v1701_v53, 0.0  ;;  %v2256_v6 = vpack.c.bf16 %v1000_v63, %v1000_v63  ;;  %v1583_v8 = vsel %vm1517_vm1, %v1000_v63, 0.0  ;;  %v1702_v12 = vmul.f32 %v1000_v63, %v1000_v63  ;;  %v1002_v14 = vpop.f32.mrb[67].mxu0  ;;  %v1146_v15 = vpop.f32.mrb[67].mxu1 }
 0x19e   : > { %1513 = vst.msk [vmem:[%s2711_s13 + $0x110] sm:$0xf] %vm1444_vm0, %v2291_v58  ;;  %v1805_v16 = vadd.f32 %v1804_v2, %v1803_v44  ;;  %v1584_v17 = vadd.f32 %v1583_v8, %v1582_v62  ;;  %v2292_v18 = vpack.c.bf16 %v3038_v1, %v3038_v1  ;;  %v1589_v8 = vsel %vm1517_vm1, %v2713_v26, 0.0 }
 0x19f   : > { %1478 = vst.msk [vmem:[%s2711_s13 + $0x84] sm:$0xf] %vm1444_vm0, %v2256_v6  ;;  %v1806_v19 = vsel %vm1517_vm1, %v1702_v12, 0.0  ;;  %v1706_v12 = vmul.f32 %v2717_v33, %v2717_v33 }
 0x1a0   : > { %v1807_v24 = vadd.f32 %v1806_v19, %v1805_v16  ;;  %1514 = vst.msk [vmem:[%s2711_s13 + $0x114] sm:$0xf] %vm1444_vm0, %v2292_v18  ;;  %v1591_v18 = vsel %vm1517_vm1, %v2717_v33, 0.0  ;;  %v1707_v19 = vmul.f32 %v2733_v46, %v2733_v46  ;;  %v1595_v33 = vsel %vm1517_vm1, %v2738_v55, 0.0 }
 0x1a2   : > { %v1005_v25 = vpop.f32.mrb[68].mxu0  ;;  %v3053_v29 = vpop.f32.mrb[68].mxu1 }
 0x1a3   : > { %v2257_v30 = vpack.c.bf16 %v1005_v25, %v1005_v25  ;;  %v1585_v32 = vsel %vm1517_vm1, %v1005_v25, 0.0  ;;  %v1703_v34 = vmul.f32 %v1005_v25, %v1005_v25  ;;  %v1007_v36 = vpop.f32.mrb[69].mxu0  ;;  %v2293_v41 = vpack.c.bf16 %v3053_v29, %v3053_v29  ;;  %v1151_v42 = vpop.f32.mrb[69].mxu1 }
 0x1a4   : > { %v1586_v44 = vadd.f32 %v1585_v32, %v1584_v17  ;;  %v1008_v45 = vpop.f32.mrb[70].mxu0  ;;  %v3060_v50 = vpop.f32.mrb[70].mxu1  ;;  %v1812_v17 = vsel %vm1517_vm1, %v1705_v43, 0.0  ;;  %v1814_v25 = vsel %vm1517_vm1, %v1706_v12, 0.0  ;;  %v1708_v32 = vmul.f32 %v2738_v55, %v2738_v55 }
 0x1a5   : > { %1479 = vst.msk [vmem:[%s2711_s13 + $0x88] sm:$0xf] %vm1444_vm0, %v2257_v30  ;;  %v1808_v52 = vsel %vm1517_vm1, %v1703_v34, 0.0  ;;  %v2258_v53 = vpack.c.bf16 %v1008_v45, %v1008_v45  ;;  %v1587_v56 = vsel %vm1517_vm1, %v1008_v45, 0.0  ;;  %v1704_v58 = vmul.f32 %v1008_v45, %v1008_v45  ;;  %v1010_v60 = vpop.f32.mrb[71].mxu0  ;;  %v1154_v62 = vpop.f32.mrb[71].mxu1 }
 0x1a6   : > { %1515 = vst.msk [vmem:[%s2711_s13 + $0x118] sm:$0xf] %vm1444_vm0, %v2293_v41  ;;  %v1809_v63 = vadd.f32 %v1808_v52, %v1807_v24  ;;  %v1588_v2 = vadd.f32 %v1587_v56, %v1586_v44  ;;  %v2294_v6 = vpack.c.bf16 %v3060_v50, %v3060_v50  ;;  %v1593_v30 = vsel %vm1517_vm1, %v2733_v46, 0.0 }
 0x1a7   : > { %1480 = vst.msk [vmem:[%s2711_s13 + $0x8c] sm:$0xf] %vm1444_vm0, %v2258_v53  ;;  %v1810_v14 = vsel %vm1517_vm1, %v1704_v58, 0.0  ;;  %v1816_v41 = vsel %vm1517_vm1, %v1707_v19, 0.0  ;;  %v1709_v42 = vmul.f32 %v2753_v4, %v2753_v4  ;;  %v1818_v45 = vsel %vm1517_vm1, %v1708_v32, 0.0 }
 0x1a8   : > { %v1590_v15 = vadd.f32 %v1589_v8, %v1588_v2  ;;  %v1811_v16 = vadd.f32 %v1810_v14, %v1809_v63  ;;  %1516 = vst.msk [vmem:[%s2711_s13 + $0x11c] sm:$0xf] %vm1444_vm0, %v2294_v6  ;;  %v1597_v46 = vsel %vm1517_vm1, %v2753_v4, 0.0  ;;  %v1710_v52 = vmul.f32 %v2758_v13, %v2758_v13 }
 0x1a9   : > { %v1820_v58 = vsel %vm1517_vm1, %v1709_v42, 0.0  ;;  %v1599_v55 = vsel %vm1517_vm1, %v2758_v13, 0.0  ;;  %v1711_v60 = vmul.f32 %v2773_v27, %v2773_v27  ;;  %v1601_v4 = vsel %vm1517_vm1, %v2773_v27, 0.0 }
 0x1aa   : > { %v1592_v26 = vadd.f32 %v1591_v18, %v1590_v15  ;;  %v1813_v24 = vadd.f32 %v1812_v17, %v1811_v16  ;;  %v1822_v2 = vsel %vm1517_vm1, %v1710_v52, 0.0  ;;  %v1712_v6 = vmul.f32 %v2778_v37, %v2778_v37 }
 0x1ab   : > { %v1824_v14 = vsel %vm1517_vm1, %v1711_v60, 0.0  ;;  %v1603_v13 = vsel %vm1517_vm1, %v2778_v37, 0.0  ;;  %v1713_v15 = vmul.f32 %v2793_v51, %v2793_v51  ;;  %v1605_v27 = vsel %vm1517_vm1, %v2793_v51, 0.0 }
 0x1ac   : > { %v1594_v34 = vadd.f32 %v1593_v30, %v1592_v26  ;;  %v1815_v36 = vadd.f32 %v1814_v25, %v1813_v24  ;;  %v1826_v18 = vsel %vm1517_vm1, %v1712_v6, 0.0  ;;  %v1714_v19 = vmul.f32 %v2798_v61, %v2798_v61 }
 0x1ad   : > { %v1828_v25 = vsel %vm1517_vm1, %v1713_v15, 0.0  ;;  %v1607_v37 = vsel %vm1517_vm1, %v2798_v61, 0.0  ;;  %v1715_v30 = vmul.f32 %v2813_v11, %v2813_v11  ;;  %v1609_v51 = vsel %vm1517_vm1, %v2813_v11, 0.0 }
 0x1ae   : > { %v1596_v43 = vadd.f32 %v1595_v33, %v1594_v34  ;;  %v1817_v44 = vadd.f32 %v1816_v41, %v1815_v36  ;;  %v1830_v36 = vsel %vm1517_vm1, %v1714_v19, 0.0  ;;  %v1716_v41 = vmul.f32 %v2818_v21, %v2818_v21 }
 0x1af   : > { %v1611_v61 = vsel %vm1517_vm1, %v2818_v21, 0.0  ;;  %v1613_v11 = vsel %vm1517_vm1, %v2833_v38, 0.0  ;;  %v1615_v21 = vsel %vm1517_vm1, %v2838_v48, 0.0  ;;  %v1719_v60 = vmul.f32 %v2853_v0, %v2853_v0 }
 0x1b0   : > { %v1598_v53 = vadd.f32 %v1597_v46, %v1596_v43  ;;  %v1819_v56 = vadd.f32 %v1818_v45, %v1817_v44  ;;  %v1832_v43 = vsel %vm1517_vm1, %v1715_v30, 0.0  ;;  %v1717_v44 = vmul.f32 %v2833_v38, %v2833_v38 }
 0x1b1   : > { %v1834_v52 = vsel %vm1517_vm1, %v1716_v41, 0.0  ;;  %v1617_v38 = vsel %vm1517_vm1, %v2853_v0, 0.0  ;;  %v1621_v0 = vsel %vm1517_vm1, %v2873_v28, 0.0  ;;  %v1724_v30 = vmul.f32 %v2898_v5, %v2898_v5 }
 0x1b2   : > { %v1600_v62 = vadd.f32 %v1599_v55, %v1598_v53  ;;  %v1821_v63 = vadd.f32 %v1820_v58, %v1819_v56  ;;  %v1718_v53 = vmul.f32 %v2838_v48, %v2838_v48  ;;  %v1836_v55 = vsel %vm1517_vm1, %v1717_v44, 0.0 }
 0x1b3   : > { %v1619_v48 = vsel %vm1517_vm1, %v2858_v10, 0.0 }
 0x1b4   : > { %v1602_v8 = vadd.f32 %v1601_v4, %v1600_v62  ;;  %v1823_v12 = vadd.f32 %v1822_v2, %v1821_v63  ;;  %v1838_v2 = vsel %vm1517_vm1, %v1718_v53, 0.0  ;;  %v1720_v4 = vmul.f32 %v2858_v10, %v2858_v10 }
 0x1b5   : > { %v1623_v10 = vsel %vm1517_vm1, %v2878_v40, 0.0 }
 0x1b6   : > { %v1604_v16 = vadd.f32 %v1603_v13, %v1602_v8  ;;  %v1825_v17 = vadd.f32 %v1824_v14, %v1823_v12  ;;  %v1840_v12 = vsel %vm1517_vm1, %v1719_v60, 0.0  ;;  %v1721_v14 = vmul.f32 %v2873_v28, %v2873_v28 }
 0x1b7   : > { %v1625_v28 = vsel %vm1517_vm1, %v2893_v57, 0.0  ;;  %v1729_v60 = vmul.f32 %v2953_v23, %v2953_v23 }
 0x1b8   : > { %v1606_v26 = vadd.f32 %v1605_v27, %v1604_v16  ;;  %v1827_v24 = vadd.f32 %v1826_v18, %v1825_v17  ;;  %v1842_v16 = vsel %vm1517_vm1, %v1720_v4, 0.0  ;;  %v1722_v17 = vmul.f32 %v2878_v40, %v2878_v40 }
 0x1b9   : > { %v1844_v19 = vsel %vm1517_vm1, %v1721_v14, 0.0  ;;  %v1627_v40 = vsel %vm1517_vm1, %v2898_v5, 0.0  ;;  %v1631_v5 = vsel %vm1517_vm1, %v2918_v35, 0.0 }
 0x1ba   : > { %v1829_v32 = vadd.f32 %v1828_v25, %v1827_v24  ;;  %v1608_v34 = vadd.f32 %v1607_v37, %v1606_v26  ;;  %v1723_v26 = vmul.f32 %v2893_v57, %v2893_v57  ;;  %v1846_v37 = vsel %vm1517_vm1, %v1722_v17, 0.0 }
 0x1bb   : > { %v1629_v57 = vsel %vm1517_vm1, %v2913_v22, 0.0 }
 0x1bc   : > { %v1610_v33 = vadd.f32 %v1609_v51, %v1608_v34  ;;  %v1831_v42 = vadd.f32 %v1830_v36, %v1829_v32  ;;  %v1848_v36 = vsel %vm1517_vm1, %v1723_v26, 0.0  ;;  %v1725_v51 = vmul.f32 %v2913_v22, %v2913_v22 }
 0x1bd   : > { %v1633_v22 = vsel %vm1517_vm1, %v2933_v54, 0.0  ;;  %v1734_v26 = vmul.f32 %v2998_v47, %v2998_v47 }
 0x1be   : > { %v1612_v45 = vadd.f32 %v1611_v61, %v1610_v33  ;;  %v1833_v46 = vadd.f32 %v1832_v43, %v1831_v42  ;;  %v1850_v42 = vsel %vm1517_vm1, %v1724_v30, 0.0  ;;  %v1726_v43 = vmul.f32 %v2918_v35, %v2918_v35 }
 0x1bf   : > { %v1635_v35 = vsel %vm1517_vm1, %v2938_v3, 0.0 }
 0x1c0   : > { %v1614_v56 = vadd.f32 %v1613_v11, %v1612_v45  ;;  %v1835_v58 = vadd.f32 %v1834_v52, %v1833_v46  ;;  %v1852_v45 = vsel %vm1517_vm1, %v1725_v51, 0.0  ;;  %v1727_v46 = vmul.f32 %v2933_v54, %v2933_v54 }
 0x1c1   : > { %v1854_v53 = vsel %vm1517_vm1, %v1726_v43, 0.0  ;;  %v1637_v54 = vsel %vm1517_vm1, %v2953_v23, 0.0  ;;  %v1641_v23 = vsel %vm1517_vm1, %v2973_v59, 0.0 }
 0x1c2   : > { %v1616_v62 = vadd.f32 %v1615_v21, %v1614_v56  ;;  %v1837_v63 = vadd.f32 %v1836_v55, %v1835_v58  ;;  %v1728_v56 = vmul.f32 %v2938_v3, %v2938_v3  ;;  %v1856_v21 = vsel %vm1517_vm1, %v1727_v46, 0.0 }
 0x1c3   : > { %v1639_v3 = vsel %vm1517_vm1, %v2958_v39, 0.0  ;;  %v1655_v46 = vsel %vm1517_vm1, %v3038_v1, 0.0 }
 0x1c4   : > { %v1618_v6 = vadd.f32 %v1617_v38, %v1616_v62  ;;  %v1839_v8 = vadd.f32 %v1838_v2, %v1837_v63  ;;  %v1858_v2 = vsel %vm1517_vm1, %v1728_v56, 0.0  ;;  %v1730_v38 = vmul.f32 %v2958_v39, %v2958_v39 }
 0x1c5   : > { %v1643_v39 = vsel %vm1517_vm1, %v2978_v9, 0.0  ;;  %v1740_v56 = vmul.f32 %v3060_v50, %v3060_v50 }
 0x1c6   : > { %v1620_v13 = vadd.f32 %v1619_v48, %v1618_v6  ;;  %v1841_v15 = vadd.f32 %v1840_v12, %v1839_v8  ;;  %v1860_v8 = vsel %vm1517_vm1, %v1729_v60, 0.0  ;;  %v1731_v12 = vmul.f32 %v2973_v59, %v2973_v59 }
 0x1c7   : > { %v1645_v59 = vsel %vm1517_vm1, %v2993_v31, 0.0  ;;  %v1882_v60 = vsel %vm1517_vm1, %v1740_v56, 0.0 }
 0x1c8   : > { %v1622_v18 = vadd.f32 %v1621_v0, %v1620_v13  ;;  %v1843_v27 = vadd.f32 %v1842_v16, %v1841_v15  ;;  %v1862_v13 = vsel %vm1517_vm1, %v1730_v38, 0.0  ;;  %v1732_v15 = vmul.f32 %v2978_v9, %v2978_v9 }
 0x1c9   : > { %v1864_v17 = vsel %vm1517_vm1, %v1731_v12, 0.0  ;;  %v1647_v9 = vsel %vm1517_vm1, %v2998_v47, 0.0  ;;  %v1651_v47 = vsel %vm1517_vm1, %v3018_v20, 0.0 }
 0x1ca   : > { %v1624_v24 = vadd.f32 %v1623_v10, %v1622_v18  ;;  %v1845_v25 = vadd.f32 %v1844_v19, %v1843_v27  ;;  %v1733_v18 = vmul.f32 %v2993_v31, %v2993_v31  ;;  %v1866_v10 = vsel %vm1517_vm1, %v1732_v15, 0.0 }
 0x1cb   : > { %v1649_v31 = vsel %vm1517_vm1, %v3013_v7, 0.0 }
 0x1cc   : > { %v1626_v32 = vadd.f32 %v1625_v28, %v1624_v24  ;;  %v1847_v34 = vadd.f32 %v1846_v37, %v1845_v25  ;;  %v1868_v37 = vsel %vm1517_vm1, %v1733_v18, 0.0  ;;  %v1735_v28 = vmul.f32 %v3013_v7, %v3013_v7 }
 0x1cd   : > { %v1653_v7 = vsel %vm1517_vm1, %v3033_v49, 0.0 }
 0x1ce   : > { %v1849_v41 = vadd.f32 %v1848_v36, %v1847_v34  ;;  %v1628_v33 = vadd.f32 %v1627_v40, %v1626_v32  ;;  %v1870_v34 = vsel %vm1517_vm1, %v1734_v26, 0.0  ;;  %v1736_v36 = vmul.f32 %v3018_v20, %v3018_v20 }
 0x1d0   : > { %v1851_v61 = vadd.f32 %v1850_v42, %v1849_v41  ;;  %v1630_v44 = vadd.f32 %v1629_v57, %v1628_v33  ;;  %v1872_v41 = vsel %vm1517_vm1, %v1735_v28, 0.0  ;;  %v1737_v33 = vmul.f32 %v3033_v49, %v3033_v49 }
 0x1d1   : > { %v1874_v43 = vsel %vm1517_vm1, %v1736_v36, 0.0 }
 0x1d2   : > { %v1853_v52 = vadd.f32 %v1852_v45, %v1851_v61  ;;  %v1632_v11 = vadd.f32 %v1631_v5, %v1630_v44  ;;  %v1738_v61 = vmul.f32 %v3038_v1, %v3038_v1  ;;  %v1739_v44 = vmul.f32 %v3053_v29, %v3053_v29 }
 0x1d3   : > { %v1876_v20 = vsel %vm1517_vm1, %v1737_v33, 0.0 }
 0x1d4   : > { %v1855_v58 = vadd.f32 %v1854_v53, %v1853_v52  ;;  %v1634_v55 = vadd.f32 %v1633_v22, %v1632_v11  ;;  %v1657_v52 = vsel %vm1517_vm1, %v3053_v29, 0.0  ;;  %v1878_v49 = vsel %vm1517_vm1, %v1738_v61, 0.0 }
 0x1d5   : > { %v1880_v22 = vsel %vm1517_vm1, %v1739_v44, 0.0 }
 0x1d6   : > { %v1857_v62 = vadd.f32 %v1856_v21, %v1855_v58  ;;  %v1636_v63 = vadd.f32 %v1635_v35, %v1634_v55  ;;  %v1659_v21 = vsel %vm1517_vm1, %v3060_v50, 0.0 }
 0x1d8   : > { %v1859_v4 = vadd.f32 %v1858_v2, %v1857_v62  ;;  %v1638_v6 = vadd.f32 %v1637_v54, %v1636_v63 }
 0x1da   : > { %v1861_v48 = vadd.f32 %v1860_v8, %v1859_v4  ;;  %v1640_v14 = vadd.f32 %v1639_v3, %v1638_v6 }
 0x1dc   : > { %v1863_v16 = vadd.f32 %v1862_v13, %v1861_v48  ;;  %v1642_v0 = vadd.f32 %v1641_v23, %v1640_v14 }
 0x1de   : > { %v1865_v27 = vadd.f32 %v1864_v17, %v1863_v16  ;;  %v1644_v19 = vadd.f32 %v1643_v39, %v1642_v0 }
 0x1e0   : > { %v1867_v24 = vadd.f32 %v1866_v10, %v1865_v27  ;;  %v1646_v25 = vadd.f32 %v1645_v59, %v1644_v19 }
 0x1e2   : > { %v1869_v30 = vadd.f32 %v1868_v37, %v1867_v24  ;;  %v1648_v32 = vadd.f32 %v1647_v9, %v1646_v25 }
 0x1e4   : > { %v1871_v40 = vadd.f32 %v1870_v34, %v1869_v30  ;;  %v1650_v51 = vadd.f32 %v1649_v31, %v1648_v32 }
 0x1e6   : > { %v1873_v42 = vadd.f32 %v1872_v41, %v1871_v40  ;;  %v1652_v57 = vadd.f32 %v1651_v47, %v1650_v51 }
 0x1e8   : > { %v1875_v45 = vadd.f32 %v1874_v43, %v1873_v42  ;;  %v1654_v5 = vadd.f32 %v1653_v7, %v1652_v57 }
 0x1ea   : > { %v1877_v11 = vadd.f32 %v1876_v20, %v1875_v45  ;;  %v1656_v53 = vadd.f32 %v1655_v46, %v1654_v5 }
 0x1ec   : > { %v1879_v58 = vadd.f32 %v1878_v49, %v1877_v11  ;;  %v1658_v55 = vadd.f32 %v1657_v52, %v1656_v53 }
 0x1ee   : > { %v1881_v35 = vadd.f32 %v1880_v22, %v1879_v58  ;;  %v1660_v1 = vadd.f32 %v1659_v21, %v1658_v55 }
 0x1f0   : > { %v1661_v29 = vrot.slane %v1660_v1, 4  ;;  %v1883_v62 = vadd.f32 %v1882_v60, %v1881_v35 }
 0x1f2   : > { %v1662_v63 = vadd.f32 %v1661_v29, %v1660_v1  ;;  %v1884_v2 = vrot.slane %v1883_v62, 4 }
 0x1f4   : > { %v1663_v54 = vrot.slane %v1662_v63, 2  ;;  %v1885_v38 = vadd.f32 %v1884_v2, %v1883_v62 }
 0x1f6   : > { %v1664_v4 = vadd.f32 %v1663_v54, %v1662_v63  ;;  %v1886_v6 = vrot.slane %v1885_v38, 2 }
 0x1f8   : > { %v1665_v8 = vrot.slane %v1664_v4, 1  ;;  %v1887_v3 = vadd.f32 %v1886_v6, %v1885_v38 }
 0x1fa   : > { %v1666_v50 = vadd.f32 %v1665_v8, %v1664_v4  ;;  %v1888_v12 = vrot.slane %v1887_v3, 1 }
 0x1fc   : > { %1668 = vst.msk [vmem:[%s267_s14] sm:$0x1] %vm1667_vm2, %v1666_v50  ;;  %v1889_v48 = vadd.f32 %v1888_v12, %v1887_v3 }
 0x1fe   : > { %1890 = vst.msk [vmem:[%s273_s22] sm:$0x1] %vm1667_vm2, %v1889_v48 }
 0x1ff PF: > { %s15_s17 = sadd.s32 1, %s2498_s17   ;;  %s3275_s15 = smov %s2494_s16 }
 0x200   : > { %p12_p6 = scmp.ge.s32.totalorder %s15_s17, 4   ;;  %s3276_s16 = smov %s3278_s18 }
 0x202   :  { %14 = sbr.rel (!%p12_p6) target bundleno = 2 (0x2), region = 85 }

</bundles_post_ra>
